<compile_context>
chip_gen: v7x
topology: tpu7x:2x2x1
jax: 0.10.0
libtpu: 0.0.40
codegen_flags: <defaults>
</compile_context>

<pallas_src>
import numpy as np
import jax
import jax.numpy as jnp
from jax import lax
from jax.experimental import pallas as pl
from jax.experimental.pallas import tpu as pltpu


# ----------------------------------------------------------------------------
# pltpu.roll probe: detect sublane-roll support and its sign convention once.
#   +1 : pltpu.roll(x, +k, axis=0)[i] == x[i-k]   (jnp.roll convention)
#   -1 : opposite convention
#    0 : unsupported -> concatenate-based shift fallback
# ----------------------------------------------------------------------------
_ROLL_MODE_CACHE = None


def _probe_roll_mode():
    global _ROLL_MODE_CACHE
    if _ROLL_MODE_CACHE is not None:
        return _ROLL_MODE_CACHE

    def probe_kernel(x_ref, o_ref):
        o_ref[...] = pltpu.roll(x_ref[...], 1, axis=0)

    mode = 0
    try:
        x = jnp.broadcast_to(jnp.arange(8, dtype=jnp.float32)[:, None], (8, 128))
        out = pl.pallas_call(
            probe_kernel,
            out_shape=jax.ShapeDtypeStruct((8, 128), jnp.float32))(x)
        col = np.asarray(jax.block_until_ready(out))[:, 0]
        ref = np.arange(8, dtype=np.float32)
        if np.array_equal(col, np.roll(ref, 1)):
            mode = 1
        elif np.array_equal(col, np.roll(ref, -1)):
            mode = -1
    except Exception:
        mode = 0
    _ROLL_MODE_CACHE = mode
    return mode


# ----------------------------------------------------------------------------
# Static-shift helpers (k is a Python int).  XLU roll when available,
# concatenate fallback otherwise.  `fill` is a (1, LN) row broadcast into the
# out-of-range region; `row` is a hoisted (T, LN) time-index iota.
# ----------------------------------------------------------------------------
def _shift_down(s, k, fill, row, roll_mode):
    """out[i] = s[i-k] for i >= k, else fill."""
    T = s.shape[0]
    if k >= T:
        return jnp.broadcast_to(fill, s.shape)
    if roll_mode != 0:
        rolled = pltpu.roll(s, (roll_mode * k) % T, axis=0)     # XLU sublane rotate
        return jnp.where(row >= k, rolled, fill)
    return jnp.concatenate(
        [jnp.broadcast_to(fill, (k, s.shape[1])), s[:T - k]], axis=0)


def _shift_up(s, k, fill, row, roll_mode):
    """out[i] = s[i+k] for i < T-k, else fill."""
    T = s.shape[0]
    if k >= T:
        return jnp.broadcast_to(fill, s.shape)
    if roll_mode != 0:
        rolled = pltpu.roll(s, (-roll_mode * k) % T, axis=0)
        return jnp.where(row < T - k, rolled, fill)
    return jnp.concatenate(
        [s[k:], jnp.broadcast_to(fill, (k, s.shape[1]))], axis=0)


# ----------------------------------------------------------------------------
# Kernel
# ----------------------------------------------------------------------------
def _make_decomposition_kernel(nbits, roll_mode):
    def kernel(wdft_ref, x_ref, xs_ref, a_ref, p_ref, xR_ref, xtr_ref):
        T, LN = x_ref.shape
        M = a_ref.shape[0]

        x_in = x_ref[...]                                            # (T, LN) f32

        # ---- seasonal: fused bf16 inverse-DFT matmul on the MXU ------------
        x_sea = jnp.dot(wdft_ref[...], xs_ref[...],
                        preferred_element_type=jnp.float32)          # (T, LN)
        x_r = x_in - x_sea

        row = lax.broadcasted_iota(jnp.int32, (T, LN), 0)            # time index
        zero_fill = jnp.zeros((1, LN), jnp.float32)

        # ---- inclusive prefix sum over time (exact f32 Hillis-Steele) ------
        cum = x_r
        k = 1
        while k < T:
            cum = cum + _shift_down(cum, k, zero_fill, row, roll_mode)
            k *= 2
        total = cum[T - 1:T, :]                                      # (1, LN)

        # ---- softmax-over-m weights (hoisted out of the m loop) ------------
        a_all = a_ref[...]                                           # (M, LN)
        a_max = jnp.max(a_all, axis=0, keepdims=True)
        e_all = jnp.exp(a_all - a_max)
        w_all = e_all * pl.reciprocal(
            jnp.sum(e_all, axis=0, keepdims=True), approx=True)      # (M, LN)
        p_all = p_ref[...]                                           # (M, LN) i32

        # TODO(synk): a native per-lane dynamic gather (take_along_axis on cum)
        # would drop the log2(T) barrel-shift factor; its Mosaic lowering is
        # not relied upon here, so the gather-free shift path is kept.
        trend = jnp.zeros((T, LN), jnp.float32)
        for m in range(M):                                           # static unroll
            p_m = p_all[m:m + 1, :]                                  # (1, LN)
            hi_sh = p_m >> 1                                         # p // 2
            lo_sh = (p_m + 1) >> 1                                   # (p-1)//2 + 1

            # Clamped per-lane shear of the prefix sum via a binary barrel
            # shift; select bits live on (1, LN) and broadcast in the where.
            s_hi = cum
            s_lo = cum
            for j in range(nbits):
                k = 1 << j
                bit_hi = ((hi_sh >> j) & 1) > 0                      # (1, LN) bool
                bit_lo = ((lo_sh >> j) & 1) > 0
                s_hi = jnp.where(
                    bit_hi, _shift_up(s_hi, k, total, row, roll_mode), s_hi)
                s_lo = jnp.where(
                    bit_lo, _shift_down(s_lo, k, zero_fill, row, roll_mode), s_lo)

            # win_sum[t] = cum[min(t + p//2, T-1)] - cum[t - (p-1)//2 - 1 or 0]
            win_sum = s_hi - s_lo                                    # (T, LN)
            hi_c = jnp.minimum(row + hi_sh, T - 1)
            lo_c = jnp.maximum(row - (lo_sh - 1), 0)
            cnt = (hi_c - lo_c + 1).astype(jnp.float32)
            trend = trend + w_all[m:m + 1, :] * (win_sum / cnt)      # exact divide

        xtr_ref[...] = trend.astype(xtr_ref.dtype)
        xR_ref[...] = (x_in - trend).astype(xR_ref.dtype)

    return kernel


# ----------------------------------------------------------------------------
# Wrapper
# ----------------------------------------------------------------------------
def decomposition(x_input, x_dft_re, x_dft_im, a, p, *, lane_tile=None):
    B, T, D = x_input.shape
    M = a.shape[1]
    BD = B * D

    if lane_tile is None:
        # 256 fills the v6e MXU N dim / halves grid steps, but only when there
        # are still >= 2 tiles so both v7x TensorCores get work from the
        # "parallel" axis; otherwise stay at 128.
        lane_tile = 256 if BD >= 512 else 128
    n_pad = -(-BD // lane_tile) * lane_tile
    pad = n_pad - BD

    # ---- host-side constant: fused inverse-DFT matrix [cos | -sin] / T -----
    # bf16 for native MXU input; angle reduced in integers first (T <= 46340).
    # TODO(synk): at large T / large |X| the bf16 spectrum limits the absolute
    # accuracy of x_sea; switch to an f32 or bf16x2-split path if needed.
    idx = jnp.arange(T, dtype=jnp.int32)
    ang = (2.0 * np.pi / T) * ((idx[:, None] * idx[None, :]) % T).astype(jnp.float32)
    w_dft = (jnp.concatenate([jnp.cos(ang), -jnp.sin(ang)], axis=1)
             * (1.0 / T)).astype(jnp.bfloat16)                       # (T, 2T)

    # ---- rearrange to column-major: time on sublanes, B*D on lanes ---------
    # TODO(synk): when D is a multiple of 128 these transposes/pads can be
    # dropped by indexing (B, T, D) directly with a squeezed-batch BlockSpec.
    def to_cols(v):      # (B, T', D) -> (T', B*D)
        return jnp.transpose(v, (1, 0, 2)).reshape(v.shape[1], BD)

    x_cols = jnp.pad(to_cols(x_input).astype(jnp.float32), ((0, 0), (0, pad)))
    xs_cols = jnp.pad(
        jnp.concatenate([to_cols(x_dft_re), to_cols(x_dft_im)], axis=0)
        .astype(jnp.float32), ((0, 0), (0, pad))).astype(jnp.bfloat16)  # (2T, n_pad)
    a_cols = jnp.pad(to_cols(a).astype(jnp.float32), ((0, 0), (0, pad)))
    p_cols = jnp.pad(to_cols(p).astype(jnp.int32), ((0, 0), (0, pad)),
                     constant_values=1)

    nbits = max(1, ((T + 1) // 2).bit_length())
    roll_mode = _probe_roll_mode()
    kernel = _make_decomposition_kernel(nbits, roll_mode)

    # ---- VMEM budget: double-buffered tiles + live f32 temporaries ---------
    f32 = 4
    per_step = (2 * (T * 2 * T) * 2                      # wdft bf16, 2 buffers
                + 2 * (2 * T * lane_tile) * 2            # spectrum bf16, 2 buffers
                + 2 * (T * lane_tile) * f32              # x tile, 2 buffers
                + 4 * (M * lane_tile) * f32              # a + p tiles
                + 4 * (T * lane_tile) * f32              # two outputs, 2 buffers
                + 12 * (T * lane_tile) * f32)            # cum/s_hi/s_lo/... temps
    vmem_limit = int(min(max(2 * per_step, 32 << 20), 48 << 20))

    grid = (n_pad // lane_tile,)
    grid_spec = pltpu.PrefetchScalarGridSpec(
        num_scalar_prefetch=0,
        grid=grid,
        in_specs=[
            # Grid-invariant DFT matrix (constant index map -> copied once).
            # On v7x at large T, pipeline_mode=pl.Buffered(1) would reclaim its
            # second buffer; left default-buffered here since it is tiny.
            pl.BlockSpec((T, 2 * T), lambda i: (0, 0)),
            pl.BlockSpec((T, lane_tile), lambda i: (0, i)),      # x columns
            pl.BlockSpec((2 * T, lane_tile), lambda i: (0, i)),  # [Re; Im] spectrum
            pl.BlockSpec((M, lane_tile), lambda i: (0, i)),      # a
            pl.BlockSpec((M, lane_tile), lambda i: (0, i)),      # p
        ],
        out_specs=[
            pl.BlockSpec((T, lane_tile), lambda i: (0, i)),      # x_R columns
            pl.BlockSpec((T, lane_tile), lambda i: (0, i)),      # x_trend columns
        ],
    )

    out_shape = (jax.ShapeDtypeStruct((T, n_pad), jnp.float32),
                 jax.ShapeDtypeStruct((T, n_pad), jnp.float32))

    xR_cols, xtr_cols = pl.pallas_call(
        kernel,
        out_shape=out_shape,
        grid_spec=grid_spec,
        compiler_params=pltpu.CompilerParams(
            dimension_semantics=("parallel",),      # distinct column tiles
            vmem_limit_bytes=vmem_limit),
    )(w_dft, x_cols, xs_cols, a_cols, p_cols)

    def from_cols(v):    # (T, n_pad) -> (B, T, D)
        return jnp.transpose(v[:, :BD].reshape(T, B, D), (1, 0, 2))

    return from_cols(xR_cols), from_cols(xtr_cols)


# ----------------------------------------------------------------------------
# Pure numpy reference (same avgpool semantics)
# ----------------------------------------------------------------------------
def _reference(x_input, x_dft, a, p):
    x_sea = np.real(np.fft.ifft(x_dft, axis=1))
    x_r = x_input - x_sea
    a_sh = a - a.max(axis=1, keepdims=True)
    w = np.exp(a_sh) / np.exp(a_sh).sum(axis=1, keepdims=True)
    B, T, D = x_input.shape
    M = a.shape[1]
    avg = np.zeros((B, M, T, D), dtype=np.float64)
    for b in range(B):
        for m in range(M):
            for d in range(D):
                P = int(p[b, m, d])
                for t in range(T):
                    lo = t - (P - 1) // 2
                    hi = lo + P - 1
                    lo = max(lo, 0)
                    hi = min(hi, T - 1)
                    avg[b, m, t, d] = x_r[b, lo:hi + 1, d].mean()
    x_trend = (w[:, :, None, :] * avg).sum(axis=1)
    x_R = x_input - x_trend
    return x_R, x_trend


if __name__ == "__main__":
    key = jax.random.PRNGKey(0)
    B, T, D, M = 2, 16, 4, 3

    x_input = jax.random.normal(key, (B, T, D), dtype=jnp.float32)

    # Emulate LocalMultiPeriodicityExtractor(m=M):
    X = jnp.fft.fft(x_input, axis=1)                      # (B, T, D) complex
    amp = jnp.abs(X)
    amp_t = jnp.transpose(amp, (0, 2, 1))                 # (B, D, T)
    a_vals, f_idx = jax.lax.top_k(amp_t, M)               # (B, D, M)
    a = jnp.transpose(a_vals, (0, 2, 1)).astype(jnp.float32)   # (B, M, D)
    f = jnp.transpose(f_idx, (0, 2, 1)) + 1               # (B, M, D)
    p = jnp.ceil(T / f).astype(jnp.int32)                 # (B, M, D)

    # Keep only the top-M frequency bins of the DFT (seasonal spectrum) so
    # x_r = x_input - Re(ifft(x_DFT)) is non-trivial.
    onehot = jax.nn.one_hot(f_idx, T, dtype=jnp.float32)       # (B, D, M, T)
    keep = jnp.transpose(onehot.sum(axis=2), (0, 2, 1))        # (B, T, D)
    x_dft = X * keep

    x_R, x_trend = decomposition(
        x_input,
        jnp.real(x_dft).astype(jnp.float32),
        jnp.imag(x_dft).astype(jnp.float32),
        a, p)
    jax.block_until_ready((x_R, x_trend))

    x_R_ref, x_trend_ref = _reference(
        np.asarray(x_input, dtype=np.float64),
        np.asarray(x_dft, dtype=np.complex128),
        np.asarray(a, dtype=np.float64),
        np.asarray(p))

    # Tolerance sized for bf16 MXU inputs on O(10)-magnitude spectral
    # coefficients plus the approx softmax reciprocal; f64 reference.
    assert np.allclose(np.asarray(x_R), x_R_ref, atol=5e-2), "x_R mismatch"
    assert np.allclose(np.asarray(x_trend), x_trend_ref, atol=5e-2), "x_trend mismatch"
    print("KERNEL_OK")
</pallas_src>

<mosaic_0001>
module attributes {stable_mosaic.version = 11 : i64} {
  func.func @probe_kernel(%arg0: memref<8x128xf32, #tpu.memory_space<vmem>>, %arg1: memref<8x128xf32, #tpu.memory_space<vmem>>) attributes {dimension_semantics = [], scalar_prefetch = 0 : i64, scratch_operands = 0 : i64, tpu.core_type = #tpu.core_type<tc>} {
    %c0 = arith.constant 0 : index
    %c0_0 = arith.constant 0 : index
    %0 = vector.load %arg0[%c0, %c0_0] : memref<8x128xf32, #tpu.memory_space<vmem>>, vector<8x128xf32>
    %c1_i32 = arith.constant 1 : i32
    %1 = tpu.dynamic_rotate %0 by %c1_i32 dim 0 : vector<8x128xf32>, i32 -> vector<8x128xf32>
    %c0_1 = arith.constant 0 : index
    %c0_2 = arith.constant 0 : index
    %2 = vector.load %arg1[%c0_1, %c0_2] : memref<8x128xf32, #tpu.memory_space<vmem>>, vector<8x128xf32>
    tpu.vector_store %arg1[%c0_1, %c0_2], %1 {strides = array<i32>} : memref<8x128xf32, #tpu.memory_space<vmem>>, vector<8x128xf32>,
    return
  }
}

module attributes {stable_mosaic.version = 11 : i64} {
  func.func @kernel(%arg0: i32, %arg1: memref<16x32xbf16, #tpu.memory_space<vmem>>, %arg2: memref<16x128xf32, #tpu.memory_space<vmem>>, %arg3: memref<32x128xbf16, #tpu.memory_space<vmem>>, %arg4: memref<3x128xf32, #tpu.memory_space<vmem>>, %arg5: memref<3x128xi32, #tpu.memory_space<vmem>>, %arg6: memref<16x128xf32, #tpu.memory_space<vmem>>, %arg7: memref<16x128xf32, #tpu.memory_space<vmem>>) attributes {dimension_semantics = [#tpu.dimension_semantics<parallel>], iteration_bounds = array<i64: 1>, scalar_prefetch = 0 : i64, scratch_operands = 0 : i64, tpu.core_type = #tpu.core_type<tc>, window_params = [{pipeline_mode = #tpu.pipeline_mode<synchronous>, transform_indices = @transform_0, window_bounds = array<i64: 16, 32>}, {transform_indices = @transform_1, window_bounds = array<i64: 16, 128>}, {transform_indices = @transform_2, window_bounds = array<i64: 32, 128>}, {transform_indices = @transform_3, window_bounds = array<i64: 3, 128>}, {transform_indices = @transform_4, window_bounds = array<i64: 3, 128>}, {transform_indices = @transform_5, window_bounds = array<i64: 16, 128>}, {transform_indices = @transform_6, window_bounds = array<i64: 16, 128>}]} {
    %c0 = arith.constant 0 : index
    %c0_0 = arith.constant 0 : index
    %0 = vector.load %arg2[%c0, %c0_0] : memref<16x128xf32, #tpu.memory_space<vmem>>, vector<16x128xf32>
    %c0_1 = arith.constant 0 : index
    %c0_2 = arith.constant 0 : index
    %1 = vector.load %arg1[%c0_1, %c0_2] : memref<16x32xbf16, #tpu.memory_space<vmem>>, vector<16x32xbf16>
    %c0_3 = arith.constant 0 : index
    %c0_4 = arith.constant 0 : index
    %2 = vector.load %arg3[%c0_3, %c0_4] : memref<32x128xbf16, #tpu.memory_space<vmem>>, vector<32x128xbf16>
    %cst = arith.constant dense<0.000000e+00> : vector<16x128xf32>
    %3 = tpu.matmul %1, %2, %cst {dimension_numbers = #tpu.dot_dimension_numbers<[1], [0], [0], [1], [0, 0, 1, 1], [], []>} : vector<16x32xbf16>, vector<32x128xbf16>, vector<16x128xf32> -> vector<16x128xf32>
    %4 = arith.subf %0, %3 : vector<16x128xf32>
    %5 = tpu.iota {dimensions = array<i32: 0>} : vector<16x128xi32>
    %cst_5 = arith.constant 0.000000e+00 : f32
    %6 = vector.broadcast %cst_5 : f32 to vector<1x128xf32>
    %7 = vector.extract_strided_slice %4 {offsets = [0, 0], sizes = [15, 128], strides = [1, 1]} : vector<16x128xf32> to vector<15x128xf32>
    %8 = tpu.concatenate %6, %7 in 0 : vector<1x128xf32>, vector<15x128xf32> -> vector<16x128xf32>
    %9 = arith.addf %4, %8 : vector<16x128xf32>
    %10 = vector.shape_cast %6 : vector<1x128xf32> to vector<1x128xf32>
    %11 = vector.broadcast %10 : vector<1x128xf32> to vector<2x128xf32>
    %12 = vector.extract_strided_slice %9 {offsets = [0, 0], sizes = [14, 128], strides = [1, 1]} : vector<16x128xf32> to vector<14x128xf32>
    %13 = tpu.concatenate %11, %12 in 0 : vector<2x128xf32>, vector<14x128xf32> -> vector<16x128xf32>
    %14 = arith.addf %9, %13 : vector<16x128xf32>
    %15 = vector.shape_cast %6 : vector<1x128xf32> to vector<1x128xf32>
    %16 = vector.broadcast %15 : vector<1x128xf32> to vector<4x128xf32>
    %17 = vector.extract_strided_slice %14 {offsets = [0, 0], sizes = [12, 128], strides = [1, 1]} : vector<16x128xf32> to vector<12x128xf32>
    %18 = tpu.concatenate %16, %17 in 0 : vector<4x128xf32>, vector<12x128xf32> -> vector<16x128xf32>
    %19 = arith.addf %14, %18 : vector<16x128xf32>
    %20 = vector.shape_cast %6 : vector<1x128xf32> to vector<1x128xf32>
    %21 = vector.broadcast %20 : vector<1x128xf32> to vector<8x128xf32>
    %22 = vector.extract_strided_slice %19 {offsets = [0, 0], sizes = [8, 128], strides = [1, 1]} : vector<16x128xf32> to vector<8x128xf32>
    %23 = tpu.concatenate %21, %22 in 0 : vector<8x128xf32>, vector<8x128xf32> -> vector<16x128xf32>
    %24 = arith.addf %19, %23 : vector<16x128xf32>
    %25 = vector.extract_strided_slice %24 {offsets = [15, 0], sizes = [1, 128], strides = [1, 1]} : vector<16x128xf32> to vector<1x128xf32>
    %c0_6 = arith.constant 0 : index
    %c0_7 = arith.constant 0 : index
    %26 = vector.load %arg4[%c0_6, %c0_7] : memref<3x128xf32, #tpu.memory_space<vmem>>, vector<3x128xf32>
    %cst_8 = arith.constant dense<0xFF800000> : vector<128xf32>
    %27 = vector.multi_reduction <maximumf>, %26, %cst_8 [0] : vector<3x128xf32> to vector<128xf32>
    %28 = vector.shape_cast %27 : vector<128xf32> to vector<1x128xf32>
    %29 = vector.broadcast %28 : vector<1x128xf32> to vector<3x128xf32>
    %30 = arith.subf %26, %29 : vector<3x128xf32>
    %31 = math.exp %30 : vector<3x128xf32>
    %cst_9 = arith.constant dense<0.000000e+00> : vector<128xf32>
    %32 = vector.multi_reduction <add>, %31, %cst_9 [0] : vector<3x128xf32> to vector<128xf32>
    %33 = vector.shape_cast %32 : vector<128xf32> to vector<1x128xf32>
    %34 = tpu.reciprocal %33 {approx = true} : vector<1x128xf32> -> vector<1x128xf32>
    %35 = vector.broadcast %34 : vector<1x128xf32> to vector<3x128xf32>
    %36 = arith.mulf %31, %35 : vector<3x128xf32>
    %c0_10 = arith.constant 0 : index
    %c0_11 = arith.constant 0 : index
    %37 = vector.load %arg5[%c0_10, %c0_11] : memref<3x128xi32, #tpu.memory_space<vmem>>, vector<3x128xi32>
    %cst_12 = arith.constant 0.000000e+00 : f32
    %38 = vector.broadcast %cst_12 : f32 to vector<16x128xf32>
    %39 = vector.extract_strided_slice %37 {offsets = [0, 0], sizes = [1, 128], strides = [1, 1]} : vector<3x128xi32> to vector<1x128xi32>
    %c1_i32 = arith.constant 1 : i32
    %40 = vector.broadcast %c1_i32 : i32 to vector<1x128xi32>
    %41 = arith.shrsi %39, %40 : vector<1x128xi32>
    %c1_i32_13 = arith.constant 1 : i32
    %42 = vector.broadcast %c1_i32_13 : i32 to vector<1x128xi32>
    %43 = arith.addi %39, %42 : vector<1x128xi32>
    %c1_i32_14 = arith.constant 1 : i32
    %44 = vector.broadcast %c1_i32_14 : i32 to vector<1x128xi32>
    %45 = arith.shrsi %43, %44 : vector<1x128xi32>
    %c0_i32 = arith.constant 0 : i32
    %46 = vector.broadcast %c0_i32 : i32 to vector<1x128xi32>
    %47 = arith.shrsi %41, %46 : vector<1x128xi32>
    %c1_i32_15 = arith.constant 1 : i32
    %48 = vector.broadcast %c1_i32_15 : i32 to vector<1x128xi32>
    %49 = arith.andi %47, %48 : vector<1x128xi32>
    %c0_i32_16 = arith.constant 0 : i32
    %50 = vector.broadcast %c0_i32_16 : i32 to vector<1x128xi32>
    %51 = arith.cmpi sgt, %49, %50 : vector<1x128xi32>
    %c0_i32_17 = arith.constant 0 : i32
    %52 = vector.broadcast %c0_i32_17 : i32 to vector<1x128xi32>
    %53 = arith.shrsi %45, %52 : vector<1x128xi32>
    %c1_i32_18 = arith.constant 1 : i32
    %54 = vector.broadcast %c1_i32_18 : i32 to vector<1x128xi32>
    %55 = arith.andi %53, %54 : vector<1x128xi32>
    %c0_i32_19 = arith.constant 0 : i32
    %56 = vector.broadcast %c0_i32_19 : i32 to vector<1x128xi32>
    %57 = arith.cmpi sgt, %55, %56 : vector<1x128xi32>
    %58 = vector.extract_strided_slice %24 {offsets = [1, 0], sizes = [15, 128], strides = [1, 1]} : vector<16x128xf32> to vector<15x128xf32>
    %59 = tpu.concatenate %58, %25 in 0 : vector<15x128xf32>, vector<1x128xf32> -> vector<16x128xf32>
    %60 = vector.shape_cast %51 : vector<1x128xi1> to vector<1x128xi1>
    %61 = vector.broadcast %60 : vector<1x128xi1> to vector<16x128xi1>
    %62 = arith.select %61, %59, %24 : vector<16x128xi1>, vector<16x128xf32>
    %63 = vector.extract_strided_slice %24 {offsets = [0, 0], sizes = [15, 128], strides = [1, 1]} : vector<16x128xf32> to vector<15x128xf32>
    %64 = tpu.concatenate %6, %63 in 0 : vector<1x128xf32>, vector<15x128xf32> -> vector<16x128xf32>
    %65 = vector.shape_cast %57 : vector<1x128xi1> to vector<1x128xi1>
    %66 = vector.broadcast %65 : vector<1x128xi1> to vector<16x128xi1>
    %67 = arith.select %66, %64, %24 : vector<16x128xi1>, vector<16x128xf32>
    %c1_i32_20 = arith.constant 1 : i32
    %68 = vector.broadcast %c1_i32_20 : i32 to vector<1x128xi32>
    %69 = arith.shrsi %41, %68 : vector<1x128xi32>
    %c1_i32_21 = arith.constant 1 : i32
    %70 = vector.broadcast %c1_i32_21 : i32 to vector<1x128xi32>
    %71 = arith.andi %69, %70 : vector<1x128xi32>
    %c0_i32_22 = arith.constant 0 : i32
    %72 = vector.broadcast %c0_i32_22 : i32 to vector<1x128xi32>
    %73 = arith.cmpi sgt, %71, %72 : vector<1x128xi32>
    %c1_i32_23 = arith.constant 1 : i32
    %74 = vector.broadcast %c1_i32_23 : i32 to vector<1x128xi32>
    %75 = arith.shrsi %45, %74 : vector<1x128xi32>
    %c1_i32_24 = arith.constant 1 : i32
    %76 = vector.broadcast %c1_i32_24 : i32 to vector<1x128xi32>
    %77 = arith.andi %75, %76 : vector<1x128xi32>
    %c0_i32_25 = arith.constant 0 : i32
    %78 = vector.broadcast %c0_i32_25 : i32 to vector<1x128xi32>
    %79 = arith.cmpi sgt, %77, %78 : vector<1x128xi32>
    %80 = vector.extract_strided_slice %62 {offsets = [2, 0], sizes = [14, 128], strides = [1, 1]} : vector<16x128xf32> to vector<14x128xf32>
    %81 = vector.shape_cast %25 : vector<1x128xf32> to vector<1x128xf32>
    %82 = vector.broadcast %81 : vector<1x128xf32> to vector<2x128xf32>
    %83 = tpu.concatenate %80, %82 in 0 : vector<14x128xf32>, vector<2x128xf32> -> vector<16x128xf32>
    %84 = vector.shape_cast %73 : vector<1x128xi1> to vector<1x128xi1>
    %85 = vector.broadcast %84 : vector<1x128xi1> to vector<16x128xi1>
    %86 = arith.select %85, %83, %62 : vector<16x128xi1>, vector<16x128xf32>
    %87 = vector.shape_cast %6 : vector<1x128xf32> to vector<1x128xf32>
    %88 = vector.broadcast %87 : vector<1x128xf32> to vector<2x128xf32>
    %89 = vector.extract_strided_slice %67 {offsets = [0, 0], sizes = [14, 128], strides = [1, 1]} : vector<16x128xf32> to vector<14x128xf32>
    %90 = tpu.concatenate %88, %89 in 0 : vector<2x128xf32>, vector<14x128xf32> -> vector<16x128xf32>
    %91 = vector.shape_cast %79 : vector<1x128xi1> to vector<1x128xi1>
    %92 = vector.broadcast %91 : vector<1x128xi1> to vector<16x128xi1>
    %93 = arith.select %92, %90, %67 : vector<16x128xi1>, vector<16x128xf32>
    %c2_i32 = arith.constant 2 : i32
    %94 = vector.broadcast %c2_i32 : i32 to vector<1x128xi32>
    %95 = arith.shrsi %41, %94 : vector<1x128xi32>
    %c1_i32_26 = arith.constant 1 : i32
    %96 = vector.broadcast %c1_i32_26 : i32 to vector<1x128xi32>
    %97 = arith.andi %95, %96 : vector<1x128xi32>
    %c0_i32_27 = arith.constant 0 : i32
    %98 = vector.broadcast %c0_i32_27 : i32 to vector<1x128xi32>
    %99 = arith.cmpi sgt, %97, %98 : vector<1x128xi32>
    %c2_i32_28 = arith.constant 2 : i32
    %100 = vector.broadcast %c2_i32_28 : i32 to vector<1x128xi32>
    %101 = arith.shrsi %45, %100 : vector<1x128xi32>
    %c1_i32_29 = arith.constant 1 : i32
    %102 = vector.broadcast %c1_i32_29 : i32 to vector<1x128xi32>
    %103 = arith.andi %101, %102 : vector<1x128xi32>
    %c0_i32_30 = arith.constant 0 : i32
    %104 = vector.broadcast %c0_i32_30 : i32 to vector<1x128xi32>
    %105 = arith.cmpi sgt, %103, %104 : vector<1x128xi32>
    %106 = vector.extract_strided_slice %86 {offsets = [4, 0], sizes = [12, 128], strides = [1, 1]} : vector<16x128xf32> to vector<12x128xf32>
    %107 = vector.shape_cast %25 : vector<1x128xf32> to vector<1x128xf32>
    %108 = vector.broadcast %107 : vector<1x128xf32> to vector<4x128xf32>
    %109 = tpu.concatenate %106, %108 in 0 : vector<12x128xf32>, vector<4x128xf32> -> vector<16x128xf32>
    %110 = vector.shape_cast %99 : vector<1x128xi1> to vector<1x128xi1>
    %111 = vector.broadcast %110 : vector<1x128xi1> to vector<16x128xi1>
    %112 = arith.select %111, %109, %86 : vector<16x128xi1>, vector<16x128xf32>
    %113 = vector.shape_cast %6 : vector<1x128xf32> to vector<1x128xf32>
    %114 = vector.broadcast %113 : vector<1x128xf32> to vector<4x128xf32>
    %115 = vector.extract_strided_slice %93 {offsets = [0, 0], sizes = [12, 128], strides = [1, 1]} : vector<16x128xf32> to vector<12x128xf32>
    %116 = tpu.concatenate %114, %115 in 0 : vector<4x128xf32>, vector<12x128xf32> -> vector<16x128xf32>
    %117 = vector.shape_cast %105 : vector<1x128xi1> to vector<1x128xi1>
    %118 = vector.broadcast %117 : vector<1x128xi1> to vector<16x128xi1>
    %119 = arith.select %118, %116, %93 : vector<16x128xi1>, vector<16x128xf32>
    %c3_i32 = arith.constant 3 : i32
    %120 = vector.broadcast %c3_i32 : i32 to vector<1x128xi32>
    %121 = arith.shrsi %41, %120 : vector<1x128xi32>
    %c1_i32_31 = arith.constant 1 : i32
    %122 = vector.broadcast %c1_i32_31 : i32 to vector<1x128xi32>
    %123 = arith.andi %121, %122 : vector<1x128xi32>
    %c0_i32_32 = arith.constant 0 : i32
    %124 = vector.broadcast %c0_i32_32 : i32 to vector<1x128xi32>
    %125 = arith.cmpi sgt, %123, %124 : vector<1x128xi32>
    %c3_i32_33 = arith.constant 3 : i32
    %126 = vector.broadcast %c3_i32_33 : i32 to vector<1x128xi32>
    %127 = arith.shrsi %45, %126 : vector<1x128xi32>
    %c1_i32_34 = arith.constant 1 : i32
    %128 = vector.broadcast %c1_i32_34 : i32 to vector<1x128xi32>
    %129 = arith.andi %127, %128 : vector<1x128xi32>
    %c0_i32_35 = arith.constant 0 : i32
    %130 = vector.broadcast %c0_i32_35 : i32 to vector<1x128xi32>
    %131 = arith.cmpi sgt, %129, %130 : vector<1x128xi32>
    %132 = vector.extract_strided_slice %112 {offsets = [8, 0], sizes = [8, 128], strides = [1, 1]} : vector<16x128xf32> to vector<8x128xf32>
    %133 = vector.shape_cast %25 : vector<1x128xf32> to vector<1x128xf32>
    %134 = vector.broadcast %133 : vector<1x128xf32> to vector<8x128xf32>
    %135 = tpu.concatenate %132, %134 in 0 : vector<8x128xf32>, vector<8x128xf32> -> vector<16x128xf32>
    %136 = vector.shape_cast %125 : vector<1x128xi1> to vector<1x128xi1>
    %137 = vector.broadcast %136 : vector<1x128xi1> to vector<16x128xi1>
    %138 = arith.select %137, %135, %112 : vector<16x128xi1>, vector<16x128xf32>
    %139 = vector.shape_cast %6 : vector<1x128xf32> to vector<1x128xf32>
    %140 = vector.broadcast %139 : vector<1x128xf32> to vector<8x128xf32>
    %141 = vector.extract_strided_slice %119 {offsets = [0, 0], sizes = [8, 128], strides = [1, 1]} : vector<16x128xf32> to vector<8x128xf32>
    %142 = tpu.concatenate %140, %141 in 0 : vector<8x128xf32>, vector<8x128xf32> -> vector<16x128xf32>
    %143 = vector.shape_cast %131 : vector<1x128xi1> to vector<1x128xi1>
    %144 = vector.broadcast %143 : vector<1x128xi1> to vector<16x128xi1>
    %145 = arith.select %144, %142, %119 : vector<16x128xi1>, vector<16x128xf32>
    %146 = arith.subf %138, %145 : vector<16x128xf32>
    %147 = vector.broadcast %41 : vector<1x128xi32> to vector<16x128xi32>
    %148 = arith.addi %5, %147 : vector<16x128xi32>
    %c15_i32 = arith.constant 15 : i32
    %149 = vector.broadcast %c15_i32 : i32 to vector<16x128xi32>
    %150 = arith.minsi %148, %149 : vector<16x128xi32>
    %c1_i32_36 = arith.constant 1 : i32
    %151 = vector.broadcast %c1_i32_36 : i32 to vector<1x128xi32>
    %152 = arith.subi %45, %151 : vector<1x128xi32>
    %153 = vector.broadcast %152 : vector<1x128xi32> to vector<16x128xi32>
    %154 = arith.subi %5, %153 : vector<16x128xi32>
    %c0_i32_37 = arith.constant 0 : i32
    %155 = vector.broadcast %c0_i32_37 : i32 to vector<16x128xi32>
    %156 = arith.maxsi %154, %155 : vector<16x128xi32>
    %157 = arith.subi %150, %156 : vector<16x128xi32>
    %c1_i32_38 = arith.constant 1 : i32
    %158 = vector.broadcast %c1_i32_38 : i32 to vector<16x128xi32>
    %159 = arith.addi %157, %158 : vector<16x128xi32>
    %160 = arith.sitofp %159 : vector<16x128xi32> to vector<16x128xf32>
    %161 = vector.extract_strided_slice %36 {offsets = [0, 0], sizes = [1, 128], strides = [1, 1]} : vector<3x128xf32> to vector<1x128xf32>
    %162 = arith.divf %146, %160 : vector<16x128xf32>
    %163 = vector.broadcast %161 : vector<1x128xf32> to vector<16x128xf32>
    %164 = arith.mulf %163, %162 : vector<16x128xf32>
    %165 = arith.addf %38, %164 : vector<16x128xf32>
    %166 = vector.extract_strided_slice %37 {offsets = [1, 0], sizes = [1, 128], strides = [1, 1]} : vector<3x128xi32> to vector<1x128xi32>
    %c1_i32_39 = arith.constant 1 : i32
    %167 = vector.broadcast %c1_i32_39 : i32 to vector<1x128xi32>
    %168 = arith.shrsi %166, %167 : vector<1x128xi32>
    %c1_i32_40 = arith.constant 1 : i32
    %169 = vector.broadcast %c1_i32_40 : i32 to vector<1x128xi32>
    %170 = arith.addi %166, %169 : vector<1x128xi32>
    %c1_i32_41 = arith.constant 1 : i32
    %171 = vector.broadcast %c1_i32_41 : i32 to vector<1x128xi32>
    %172 = arith.shrsi %170, %171 : vector<1x128xi32>
    %c0_i32_42 = arith.constant 0 : i32
    %173 = vector.broadcast %c0_i32_42 : i32 to vector<1x128xi32>
    %174 = arith.shrsi %168, %173 : vector<1x128xi32>
    %c1_i32_43 = arith.constant 1 : i32
    %175 = vector.broadcast %c1_i32_43 : i32 to vector<1x128xi32>
    %176 = arith.andi %174, %175 : vector<1x128xi32>
    %c0_i32_44 = arith.constant 0 : i32
    %177 = vector.broadcast %c0_i32_44 : i32 to vector<1x128xi32>
    %178 = arith.cmpi sgt, %176, %177 : vector<1x128xi32>
    %c0_i32_45 = arith.constant 0 : i32
    %179 = vector.broadcast %c0_i32_45 : i32 to vector<1x128xi32>
    %180 = arith.shrsi %172, %179 : vector<1x128xi32>
    %c1_i32_46 = arith.constant 1 : i32
    %181 = vector.broadcast %c1_i32_46 : i32 to vector<1x128xi32>
    %182 = arith.andi %180, %181 : vector<1x128xi32>
    %c0_i32_47 = arith.constant 0 : i32
    %183 = vector.broadcast %c0_i32_47 : i32 to vector<1x128xi32>
    %184 = arith.cmpi sgt, %182, %183 : vector<1x128xi32>
    %185 = vector.extract_strided_slice %24 {offsets = [1, 0], sizes = [15, 128], strides = [1, 1]} : vector<16x128xf32> to vector<15x128xf32>
    %186 = tpu.concatenate %185, %25 in 0 : vector<15x128xf32>, vector<1x128xf32> -> vector<16x128xf32>
    %187 = vector.shape_cast %178 : vector<1x128xi1> to vector<1x128xi1>
    %188 = vector.broadcast %187 : vector<1x128xi1> to vector<16x128xi1>
    %189 = arith.select %188, %186, %24 : vector<16x128xi1>, vector<16x128xf32>
    %190 = vector.extract_strided_slice %24 {offsets = [0, 0], sizes = [15, 128], strides = [1, 1]} : vector<16x128xf32> to vector<15x128xf32>
    %191 = tpu.concatenate %6, %190 in 0 : vector<1x128xf32>, vector<15x128xf32> -> vector<16x128xf32>
    %192 = vector.shape_cast %184 : vector<1x128xi1> to vector<1x128xi1>
    %193 = vector.broadcast %192 : vector<1x128xi1> to vector<16x128xi1>
    %194 = arith.select %193, %191, %24 : vector<16x128xi1>, vector<16x128xf32>
    %c1_i32_48 = arith.constant 1 : i32
    %195 = vector.broadcast %c1_i32_48 : i32 to vector<1x128xi32>
    %196 = arith.shrsi %168, %195 : vector<1x128xi32>
    %c1_i32_49 = arith.constant 1 : i32
    %197 = vector.broadcast %c1_i32_49 : i32 to vector<1x128xi32>
    %198 = arith.andi %196, %197 : vector<1x128xi32>
    %c0_i32_50 = arith.constant 0 : i32
    %199 = vector.broadcast %c0_i32_50 : i32 to vector<1x128xi32>
    %200 = arith.cmpi sgt, %198, %199 : vector<1x128xi32>
    %c1_i32_51 = arith.constant 1 : i32
    %201 = vector.broadcast %c1_i32_51 : i32 to vector<1x128xi32>
    %202 = arith.shrsi %172, %201 : vector<1x128xi32>
    %c1_i32_52 = arith.constant 1 : i32
    %203 = vector.broadcast %c1_i32_52 : i32 to vector<1x128xi32>
    %204 = arith.andi %202, %203 : vector<1x128xi32>
    %c0_i32_53 = arith.constant 0 : i32
    %205 = vector.broadcast %c0_i32_53 : i32 to vector<1x128xi32>
    %206 = arith.cmpi sgt, %204, %205 : vector<1x128xi32>
    %207 = vector.extract_strided_slice %189 {offsets = [2, 0], sizes = [14, 128], strides = [1, 1]} : vector<16x128xf32> to vector<14x128xf32>
    %208 = vector.shape_cast %25 : vector<1x128xf32> to vector<1x128xf32>
    %209 = vector.broadcast %208 : vector<1x128xf32> to vector<2x128xf32>
    %210 = tpu.concatenate %207, %209 in 0 : vector<14x128xf32>, vector<2x128xf32> -> vector<16x128xf32>
    %211 = vector.shape_cast %200 : vector<1x128xi1> to vector<1x128xi1>
    %212 = vector.broadcast %211 : vector<1x128xi1> to vector<16x128xi1>
    %213 = arith.select %212, %210, %189 : vector<16x128xi1>, vector<16x128xf32>
    %214 = vector.shape_cast %6 : vector<1x128xf32> to vector<1x128xf32>
    %215 = vector.broadcast %214 : vector<1x128xf32> to vector<2x128xf32>
    %216 = vector.extract_strided_slice %194 {offsets = [0, 0], sizes = [14, 128], strides = [1, 1]} : vector<16x128xf32> to vector<14x128xf32>
    %217 = tpu.concatenate %215, %216 in 0 : vector<2x128xf32>, vector<14x128xf32> -> vector<16x128xf32>
    %218 = vector.shape_cast %206 : vector<1x128xi1> to vector<1x128xi1>
    %219 = vector.broadcast %218 : vector<1x128xi1> to vector<16x128xi1>
    %220 = arith.select %219, %217, %194 : vector<16x128xi1>, vector<16x128xf32>
    %c2_i32_54 = arith.constant 2 : i32
    %221 = vector.broadcast %c2_i32_54 : i32 to vector<1x128xi32>
    %222 = arith.shrsi %168, %221 : vector<1x128xi32>
    %c1_i32_55 = arith.constant 1 : i32
    %223 = vector.broadcast %c1_i32_55 : i32 to vector<1x128xi32>
    %224 = arith.andi %222, %223 : vector<1x128xi32>
    %c0_i32_56 = arith.constant 0 : i32
    %225 = vector.broadcast %c0_i32_56 : i32 to vector<1x128xi32>
    %226 = arith.cmpi sgt, %224, %225 : vector<1x128xi32>
    %c2_i32_57 = arith.constant 2 : i32
    %227 = vector.broadcast %c2_i32_57 : i32 to vector<1x128xi32>
    %228 = arith.shrsi %172, %227 : vector<1x128xi32>
    %c1_i32_58 = arith.constant 1 : i32
    %229 = vector.broadcast %c1_i32_58 : i32 to vector<1x128xi32>
    %230 = arith.andi %228, %229 : vector<1x128xi32>
    %c0_i32_59 = arith.constant 0 : i32
    %231 = vector.broadcast %c0_i32_59 : i32 to vector<1x128xi32>
    %232 = arith.cmpi sgt, %230, %231 : vector<1x128xi32>
    %233 = vector.extract_strided_slice %213 {offsets = [4, 0], sizes = [12, 128], strides = [1, 1]} : vector<16x128xf32> to vector<12x128xf32>
    %234 = vector.shape_cast %25 : vector<1x128xf32> to vector<1x128xf32>
    %235 = vector.broadcast %234 : vector<1x128xf32> to vector<4x128xf32>
    %236 = tpu.concatenate %233, %235 in 0 : vector<12x128xf32>, vector<4x128xf32> -> vector<16x128xf32>
    %237 = vector.shape_cast %226 : vector<1x128xi1> to vector<1x128xi1>
    %238 = vector.broadcast %237 : vector<1x128xi1> to vector<16x128xi1>
    %239 = arith.select %238, %236, %213 : vector<16x128xi1>, vector<16x128xf32>
    %240 = vector.shape_cast %6 : vector<1x128xf32> to vector<1x128xf32>
    %241 = vector.broadcast %240 : vector<1x128xf32> to vector<4x128xf32>
    %242 = vector.extract_strided_slice %220 {offsets = [0, 0], sizes = [12, 128], strides = [1, 1]} : vector<16x128xf32> to vector<12x128xf32>
    %243 = tpu.concatenate %241, %242 in 0 : vector<4x128xf32>, vector<12x128xf32> -> vector<16x128xf32>
    %244 = vector.shape_cast %232 : vector<1x128xi1> to vector<1x128xi1>
    %245 = vector.broadcast %244 : vector<1x128xi1> to vector<16x128xi1>
    %246 = arith.select %245, %243, %220 : vector<16x128xi1>, vector<16x128xf32>
    %c3_i32_60 = arith.constant 3 : i32
    %247 = vector.broadcast %c3_i32_60 : i32 to vector<1x128xi32>
    %248 = arith.shrsi %168, %247 : vector<1x128xi32>
    %c1_i32_61 = arith.constant 1 : i32
    %249 = vector.broadcast %c1_i32_61 : i32 to vector<1x128xi32>
    %250 = arith.andi %248, %249 : vector<1x128xi32>
    %c0_i32_62 = arith.constant 0 : i32
    %251 = vector.broadcast %c0_i32_62 : i32 to vector<1x128xi32>
    %252 = arith.cmpi sgt, %250, %251 : vector<1x128xi32>
    %c3_i32_63 = arith.constant 3 : i32
    %253 = vector.broadcast %c3_i32_63 : i32 to vector<1x128xi32>
    %254 = arith.shrsi %172, %253 : vector<1x128xi32>
    %c1_i32_64 = arith.constant 1 : i32
    %255 = vector.broadcast %c1_i32_64 : i32 to vector<1x128xi32>
    %256 = arith.andi %254, %255 : vector<1x128xi32>
    %c0_i32_65 = arith.constant 0 : i32
    %257 = vector.broadcast %c0_i32_65 : i32 to vector<1x128xi32>
    %258 = arith.cmpi sgt, %256, %257 : vector<1x128xi32>
    %259 = vector.extract_strided_slice %239 {offsets = [8, 0], sizes = [8, 128], strides = [1, 1]} : vector<16x128xf32> to vector<8x128xf32>
    %260 = vector.shape_cast %25 : vector<1x128xf32> to vector<1x128xf32>
    %261 = vector.broadcast %260 : vector<1x128xf32> to vector<8x128xf32>
    %262 = tpu.concatenate %259, %261 in 0 : vector<8x128xf32>, vector<8x128xf32> -> vector<16x128xf32>
    %263 = vector.shape_cast %252 : vector<1x128xi1> to vector<1x128xi1>
    %264 = vector.broadcast %263 : vector<1x128xi1> to vector<16x128xi1>
    %265 = arith.select %264, %262, %239 : vector<16x128xi1>, vector<16x128xf32>
    %266 = vector.shape_cast %6 : vector<1x128xf32> to vector<1x128xf32>
    %267 = vector.broadcast %266 : vector<1x128xf32> to vector<8x128xf32>
    %268 = vector.extract_strided_slice %246 {offsets = [0, 0], sizes = [8, 128], strides = [1, 1]} : vector<16x128xf32> to vector<8x128xf32>
    %269 = tpu.concatenate %267, %268 in 0 : vector<8x128xf32>, vector<8x128xf32> -> vector<16x128xf32>
    %270 = vector.shape_cast %258 : vector<1x128xi1> to vector<1x128xi1>
    %271 = vector.broadcast %270 : vector<1x128xi1> to vector<16x128xi1>
    %272 = arith.select %271, %269, %246 : vector<16x128xi1>, vector<16x128xf32>
    %273 = arith.subf %265, %272 : vector<16x128xf32>
    %274 = vector.broadcast %168 : vector<1x128xi32> to vector<16x128xi32>
    %275 = arith.addi %5, %274 : vector<16x128xi32>
    %c15_i32_66 = arith.constant 15 : i32
    %276 = vector.broadcast %c15_i32_66 : i32 to vector<16x128xi32>
    %277 = arith.minsi %275, %276 : vector<16x128xi32>
    %c1_i32_67 = arith.constant 1 : i32
    %278 = vector.broadcast %c1_i32_67 : i32 to vector<1x128xi32>
    %279 = arith.subi %172, %278 : vector<1x128xi32>
    %280 = vector.broadcast %279 : vector<1x128xi32> to vector<16x128xi32>
    %281 = arith.subi %5, %280 : vector<16x128xi32>
    %c0_i32_68 = arith.constant 0 : i32
    %282 = vector.broadcast %c0_i32_68 : i32 to vector<16x128xi32>
    %283 = arith.maxsi %281, %282 : vector<16x128xi32>
    %284 = arith.subi %277, %283 : vector<16x128xi32>
    %c1_i32_69 = arith.constant 1 : i32
    %285 = vector.broadcast %c1_i32_69 : i32 to vector<16x128xi32>
    %286 = arith.addi %284, %285 : vector<16x128xi32>
    %287 = arith.sitofp %286 : vector<16x128xi32> to vector<16x128xf32>
    %288 = vector.extract_strided_slice %36 {offsets = [1, 0], sizes = [1, 128], strides = [1, 1]} : vector<3x128xf32> to vector<1x128xf32>
    %289 = arith.divf %273, %287 : vector<16x128xf32>
    %290 = vector.broadcast %288 : vector<1x128xf32> to vector<16x128xf32>
    %291 = arith.mulf %290, %289 : vector<16x128xf32>
    %292 = arith.addf %165, %291 : vector<16x128xf32>
    %293 = vector.extract_strided_slice %37 {offsets = [2, 0], sizes = [1, 128], strides = [1, 1]} : vector<3x128xi32> to vector<1x128xi32>
    %c1_i32_70 = arith.constant 1 : i32
    %294 = vector.broadcast %c1_i32_70 : i32 to vector<1x128xi32>
    %295 = arith.shrsi %293, %294 : vector<1x128xi32>
    %c1_i32_71 = arith.constant 1 : i32
    %296 = vector.broadcast %c1_i32_71 : i32 to vector<1x128xi32>
    %297 = arith.addi %293, %296 : vector<1x128xi32>
    %c1_i32_72 = arith.constant 1 : i32
    %298 = vector.broadcast %c1_i32_72 : i32 to vector<1x128xi32>
    %299 = arith.shrsi %297, %298 : vector<1x128xi32>
    %c0_i32_73 = arith.constant 0 : i32
    %300 = vector.broadcast %c0_i32_73 : i32 to vector<1x128xi32>
    %301 = arith.shrsi %295, %300 : vector<1x128xi32>
    %c1_i32_74 = arith.constant 1 : i32
    %302 = vector.broadcast %c1_i32_74 : i32 to vector<1x128xi32>
    %303 = arith.andi %301, %302 : vector<1x128xi32>
    %c0_i32_75 = arith.constant 0 : i32
    %304 = vector.broadcast %c0_i32_75 : i32 to vector<1x128xi32>
    %305 = arith.cmpi sgt, %303, %304 : vector<1x128xi32>
    %c0_i32_76 = arith.constant 0 : i32
    %306 = vector.broadcast %c0_i32_76 : i32 to vector<1x128xi32>
    %307 = arith.shrsi %299, %306 : vector<1x128xi32>
    %c1_i32_77 = arith.constant 1 : i32
    %308 = vector.broadcast %c1_i32_77 : i32 to vector<1x128xi32>
    %309 = arith.andi %307, %308 : vector<1x128xi32>
    %c0_i32_78 = arith.constant 0 : i32
    %310 = vector.broadcast %c0_i32_78 : i32 to vector<1x128xi32>
    %311 = arith.cmpi sgt, %309, %310 : vector<1x128xi32>
    %312 = vector.extract_strided_slice %24 {offsets = [1, 0], sizes = [15, 128], strides = [1, 1]} : vector<16x128xf32> to vector<15x128xf32>
    %313 = tpu.concatenate %312, %25 in 0 : vector<15x128xf32>, vector<1x128xf32> -> vector<16x128xf32>
    %314 = vector.shape_cast %305 : vector<1x128xi1> to vector<1x128xi1>
    %315 = vector.broadcast %314 : vector<1x128xi1> to vector<16x128xi1>
    %316 = arith.select %315, %313, %24 : vector<16x128xi1>, vector<16x128xf32>
    %317 = vector.extract_strided_slice %24 {offsets = [0, 0], sizes = [15, 128], strides = [1, 1]} : vector<16x128xf32> to vector<15x128xf32>
    %318 = tpu.concatenate %6, %317 in 0 : vector<1x128xf32>, vector<15x128xf32> -> vector<16x128xf32>
    %319 = vector.shape_cast %311 : vector<1x128xi1> to vector<1x128xi1>
    %320 = vector.broadcast %319 : vector<1x128xi1> to vector<16x128xi1>
    %321 = arith.select %320, %318, %24 : vector<16x128xi1>, vector<16x128xf32>
    %c1_i32_79 = arith.constant 1 : i32
    %322 = vector.broadcast %c1_i32_79 : i32 to vector<1x128xi32>
    %323 = arith.shrsi %295, %322 : vector<1x128xi32>
    %c1_i32_80 = arith.constant 1 : i32
    %324 = vector.broadcast %c1_i32_80 : i32 to vector<1x128xi32>
    %325 = arith.andi %323, %324 : vector<1x128xi32>
    %c0_i32_81 = arith.constant 0 : i32
    %326 = vector.broadcast %c0_i32_81 : i32 to vector<1x128xi32>
    %327 = arith.cmpi sgt, %325, %326 : vector<1x128xi32>
    %c1_i32_82 = arith.constant 1 : i32
    %328 = vector.broadcast %c1_i32_82 : i32 to vector<1x128xi32>
    %329 = arith.shrsi %299, %328 : vector<1x128xi32>
    %c1_i32_83 = arith.constant 1 : i32
    %330 = vector.broadcast %c1_i32_83 : i32 to vector<1x128xi32>
    %331 = arith.andi %329, %330 : vector<1x128xi32>
    %c0_i32_84 = arith.constant 0 : i32
    %332 = vector.broadcast %c0_i32_84 : i32 to vector<1x128xi32>
    %333 = arith.cmpi sgt, %331, %332 : vector<1x128xi32>
    %334 = vector.extract_strided_slice %316 {offsets = [2, 0], sizes = [14, 128], strides = [1, 1]} : vector<16x128xf32> to vector<14x128xf32>
    %335 = vector.shape_cast %25 : vector<1x128xf32> to vector<1x128xf32>
    %336 = vector.broadcast %335 : vector<1x128xf32> to vector<2x128xf32>
    %337 = tpu.concatenate %334, %336 in 0 : vector<14x128xf32>, vector<2x128xf32> -> vector<16x128xf32>
    %338 = vector.shape_cast %327 : vector<1x128xi1> to vector<1x128xi1>
    %339 = vector.broadcast %338 : vector<1x128xi1> to vector<16x128xi1>
    %340 = arith.select %339, %337, %316 : vector<16x128xi1>, vector<16x128xf32>
    %341 = vector.shape_cast %6 : vector<1x128xf32> to vector<1x128xf32>
    %342 = vector.broadcast %341 : vector<1x128xf32> to vector<2x128xf32>
    %343 = vector.extract_strided_slice %321 {offsets = [0, 0], sizes = [14, 128], strides = [1, 1]} : vector<16x128xf32> to vector<14x128xf32>
    %344 = tpu.concatenate %342, %343 in 0 : vector<2x128xf32>, vector<14x128xf32> -> vector<16x128xf32>
    %345 = vector.shape_cast %333 : vector<1x128xi1> to vector<1x128xi1>
    %346 = vector.broadcast %345 : vector<1x128xi1> to vector<16x128xi1>
    %347 = arith.select %346, %344, %321 : vector<16x128xi1>, vector<16x128xf32>
    %c2_i32_85 = arith.constant 2 : i32
    %348 = vector.broadcast %c2_i32_85 : i32 to vector<1x128xi32>
    %349 = arith.shrsi %295, %348 : vector<1x128xi32>
    %c1_i32_86 = arith.constant 1 : i32
    %350 = vector.broadcast %c1_i32_86 : i32 to vector<1x128xi32>
    %351 = arith.andi %349, %350 : vector<1x128xi32>
    %c0_i32_87 = arith.constant 0 : i32
    %352 = vector.broadcast %c0_i32_87 : i32 to vector<1x128xi32>
    %353 = arith.cmpi sgt, %351, %352 : vector<1x128xi32>
    %c2_i32_88 = arith.constant 2 : i32
    %354 = vector.broadcast %c2_i32_88 : i32 to vector<1x128xi32>
    %355 = arith.shrsi %299, %354 : vector<1x128xi32>
    %c1_i32_89 = arith.constant 1 : i32
    %356 = vector.broadcast %c1_i32_89 : i32 to vector<1x128xi32>
    %357 = arith.andi %355, %356 : vector<1x128xi32>
    %c0_i32_90 = arith.constant 0 : i32
    %358 = vector.broadcast %c0_i32_90 : i32 to vector<1x128xi32>
    %359 = arith.cmpi sgt, %357, %358 : vector<1x128xi32>
    %360 = vector.extract_strided_slice %340 {offsets = [4, 0], sizes = [12, 128], strides = [1, 1]} : vector<16x128xf32> to vector<12x128xf32>
    %361 = vector.shape_cast %25 : vector<1x128xf32> to vector<1x128xf32>
    %362 = vector.broadcast %361 : vector<1x128xf32> to vector<4x128xf32>
    %363 = tpu.concatenate %360, %362 in 0 : vector<12x128xf32>, vector<4x128xf32> -> vector<16x128xf32>
    %364 = vector.shape_cast %353 : vector<1x128xi1> to vector<1x128xi1>
    %365 = vector.broadcast %364 : vector<1x128xi1> to vector<16x128xi1>
    %366 = arith.select %365, %363, %340 : vector<16x128xi1>, vector<16x128xf32>
    %367 = vector.shape_cast %6 : vector<1x128xf32> to vector<1x128xf32>
    %368 = vector.broadcast %367 : vector<1x128xf32> to vector<4x128xf32>
    %369 = vector.extract_strided_slice %347 {offsets = [0, 0], sizes = [12, 128], strides = [1, 1]} : vector<16x128xf32> to vector<12x128xf32>
    %370 = tpu.concatenate %368, %369 in 0 : vector<4x128xf32>, vector<12x128xf32> -> vector<16x128xf32>
    %371 = vector.shape_cast %359 : vector<1x128xi1> to vector<1x128xi1>
    %372 = vector.broadcast %371 : vector<1x128xi1> to vector<16x128xi1>
    %373 = arith.select %372, %370, %347 : vector<16x128xi1>, vector<16x128xf32>
    %c3_i32_91 = arith.constant 3 : i32
    %374 = vector.broadcast %c3_i32_91 : i32 to vector<1x128xi32>
    %375 = arith.shrsi %295, %374 : vector<1x128xi32>
    %c1_i32_92 = arith.constant 1 : i32
    %376 = vector.broadcast %c1_i32_92 : i32 to vector<1x128xi32>
    %377 = arith.andi %375, %376 : vector<1x128xi32>
    %c0_i32_93 = arith.constant 0 : i32
    %378 = vector.broadcast %c0_i32_93 : i32 to vector<1x128xi32>
    %379 = arith.cmpi sgt, %377, %378 : vector<1x128xi32>
    %c3_i32_94 = arith.constant 3 : i32
    %380 = vector.broadcast %c3_i32_94 : i32 to vector<1x128xi32>
    %381 = arith.shrsi %299, %380 : vector<1x128xi32>
    %c1_i32_95 = arith.constant 1 : i32
    %382 = vector.broadcast %c1_i32_95 : i32 to vector<1x128xi32>
    %383 = arith.andi %381, %382 : vector<1x128xi32>
    %c0_i32_96 = arith.constant 0 : i32
    %384 = vector.broadcast %c0_i32_96 : i32 to vector<1x128xi32>
    %385 = arith.cmpi sgt, %383, %384 : vector<1x128xi32>
    %386 = vector.extract_strided_slice %366 {offsets = [8, 0], sizes = [8, 128], strides = [1, 1]} : vector<16x128xf32> to vector<8x128xf32>
    %387 = vector.shape_cast %25 : vector<1x128xf32> to vector<1x128xf32>
    %388 = vector.broadcast %387 : vector<1x128xf32> to vector<8x128xf32>
    %389 = tpu.concatenate %386, %388 in 0 : vector<8x128xf32>, vector<8x128xf32> -> vector<16x128xf32>
    %390 = vector.shape_cast %379 : vector<1x128xi1> to vector<1x128xi1>
    %391 = vector.broadcast %390 : vector<1x128xi1> to vector<16x128xi1>
    %392 = arith.select %391, %389, %366 : vector<16x128xi1>, vector<16x128xf32>
    %393 = vector.shape_cast %6 : vector<1x128xf32> to vector<1x128xf32>
    %394 = vector.broadcast %393 : vector<1x128xf32> to vector<8x128xf32>
    %395 = vector.extract_strided_slice %373 {offsets = [0, 0], sizes = [8, 128], strides = [1, 1]} : vector<16x128xf32> to vector<8x128xf32>
    %396 = tpu.concatenate %394, %395 in 0 : vector<8x128xf32>, vector<8x128xf32> -> vector<16x128xf32>
    %397 = vector.shape_cast %385 : vector<1x128xi1> to vector<1x128xi1>
    %398 = vector.broadcast %397 : vector<1x128xi1> to vector<16x128xi1>
    %399 = arith.select %398, %396, %373 : vector<16x128xi1>, vector<16x128xf32>
    %400 = arith.subf %392, %399 : vector<16x128xf32>
    %401 = vector.broadcast %295 : vector<1x128xi32> to vector<16x128xi32>
    %402 = arith.addi %5, %401 : vector<16x128xi32>
    %c15_i32_97 = arith.constant 15 : i32
    %403 = vector.broadcast %c15_i32_97 : i32 to vector<16x128xi32>
    %404 = arith.minsi %402, %403 : vector<16x128xi32>
    %c1_i32_98 = arith.constant 1 : i32
    %405 = vector.broadcast %c1_i32_98 : i32 to vector<1x128xi32>
    %406 = arith.subi %299, %405 : vector<1x128xi32>
    %407 = vector.broadcast %406 : vector<1x128xi32> to vector<16x128xi32>
    %408 = arith.subi %5, %407 : vector<16x128xi32>
    %c0_i32_99 = arith.constant 0 : i32
    %409 = vector.broadcast %c0_i32_99 : i32 to vector<16x128xi32>
    %410 = arith.maxsi %408, %409 : vector<16x128xi32>
    %411 = arith.subi %404, %410 : vector<16x128xi32>
    %c1_i32_100 = arith.constant 1 : i32
    %412 = vector.broadcast %c1_i32_100 : i32 to vector<16x128xi32>
    %413 = arith.addi %411, %412 : vector<16x128xi32>
    %414 = arith.sitofp %413 : vector<16x128xi32> to vector<16x128xf32>
    %415 = vector.extract_strided_slice %36 {offsets = [2, 0], sizes = [1, 128], strides = [1, 1]} : vector<3x128xf32> to vector<1x128xf32>
    %416 = arith.divf %400, %414 : vector<16x128xf32>
    %417 = vector.broadcast %415 : vector<1x128xf32> to vector<16x128xf32>
    %418 = arith.mulf %417, %416 : vector<16x128xf32>
    %419 = arith.addf %292, %418 : vector<16x128xf32>
    %c0_101 = arith.constant 0 : index
    %c0_102 = arith.constant 0 : index
    %420 = vector.load %arg7[%c0_101, %c0_102] : memref<16x128xf32, #tpu.memory_space<vmem>>, vector<16x128xf32>
    tpu.vector_store %arg7[%c0_101, %c0_102], %419 {strides = array<i32>} : memref<16x128xf32, #tpu.memory_space<vmem>>, vector<16x128xf32>,
    %421 = arith.subf %0, %419 : vector<16x128xf32>
    %c0_103 = arith.constant 0 : index
    %c0_104 = arith.constant 0 : index
    %422 = vector.load %arg6[%c0_103, %c0_104] : memref<16x128xf32, #tpu.memory_space<vmem>>, vector<16x128xf32>
    tpu.vector_store %arg6[%c0_103, %c0_104], %421 {strides = array<i32>} : memref<16x128xf32, #tpu.memory_space<vmem>>, vector<16x128xf32>,
    return
  }
  func.func @transform_0(%arg0: i32) -> (i32, i32) {
    %c0_i32 = arith.constant 0 : i32
    %c0_i32_0 = arith.constant 0 : i32
    %c0_i32_1 = arith.constant 0 : i32
    return %c0_i32, %c0_i32_0 : i32, i32
  }
  func.func @transform_1(%arg0: i32) -> (i32, i32) {
    %c0_i32 = arith.constant 0 : i32
    %c0_i32_0 = arith.constant 0 : i32
    return %c0_i32, %arg0 : i32, i32
  }
  func.func @transform_2(%arg0: i32) -> (i32, i32) {
    %c0_i32 = arith.constant 0 : i32
    %c0_i32_0 = arith.constant 0 : i32
    return %c0_i32, %arg0 : i32, i32
  }
  func.func @transform_3(%arg0: i32) -> (i32, i32) {
    %c0_i32 = arith.constant 0 : i32
    %c0_i32_0 = arith.constant 0 : i32
    return %c0_i32, %arg0 : i32, i32
  }
  func.func @transform_4(%arg0: i32) -> (i32, i32) {
    %c0_i32 = arith.constant 0 : i32
    %c0_i32_0 = arith.constant 0 : i32
    return %c0_i32, %arg0 : i32, i32
  }
  func.func @transform_5(%arg0: i32) -> (i32, i32) {
    %c0_i32 = arith.constant 0 : i32
    %c0_i32_0 = arith.constant 0 : i32
    return %c0_i32, %arg0 : i32, i32
  }
  func.func @transform_6(%arg0: i32) -> (i32, i32) {
    %c0_i32 = arith.constant 0 : i32
    %c0_i32_0 = arith.constant 0 : i32
    return %c0_i32, %arg0 : i32, i32
  }
}

</mosaic_0001>

<bundles_post_ra>
// kernel: tpu_custom_call.1
= control target key start
LH: loop header
LB: loop body
LE: loop exit
PB: predicated region body
PF: predicated region fallthrough
CT: control target
= control target key end

     0   :  { %6 = vsyncpa [#allocation3], 0  ;;  %s125_s0 = inlined_call_operand.hbm [shape: f32[8,128], index: 0, kind: input, shape index: {}]   ;;  %s126_s1 = inlined_call_operand.hbm [shape: f32[8,128], index: 1, kind: output, shape index: {}]  }
   0x1   :  { %7 = vsyncpa [#allocation4], 0  ;;  %s89_s6 = smov [#allocation2]   ;;  %s41_s10 = scalar_lea.hbm %s125_s0, 128 }
   0x2   :  { %s14_s7 = sshll.u32 %s89_s6, 4  ;;  %p42_p0 = scmp.ne.s32.totalorder %s125_s0, %s41_s10  ;;  %s15_s7 = int_to_ptr.vmem [resolvable:$true] %s14_s7 }
   0x3   :  { %p45_p1 = scmp.lt.u32.totalorder %s41_s10, %s125_s0 }
   0x5   :  { %p47_p2 = pnand %p45_p1, %p42_p0 }
   0x7   :  { %50 = shalt.err (!%p47_p2)
}
   0x8   :  { %s51_s15 = scalar_lea.vmem %s15_s7, 128  ;;  %p56_p4 = scmp.lt.s32.totalorder %s15_s7, %s15_s7 }
   0x9   :  { %p52_p3 = scmp.ne.s32.totalorder %s15_s7, %s51_s15  ;;  %p57_p5 = scmp.lt.s32.totalorder %s51_s15, %s51_s15 }
   0xb   :  { %p58_p6 = por %p57_p5, %p56_p4 }
   0xd   :  { %p59_p7 = pnand %p58_p6, %p52_p3 }
   0xf   :  { %62 = shalt.err (!%p59_p7)
}
  0x10   :  { %17 = dma.hbm_to_vmem [thread:$0]  %s125_s0, 128, %s15_s7, [#allocation3]  }
  0x11   :  { %85 = dma.done.wait [#allocation3], 128  }
  0x12   :  { %86 = vsyncadd [#allocation3], 4294967168  ;;  %s90_s18 = smov [#allocation5]   ;;  %v21_v0 = vld [vmem:[#allocation2] sm:$0xff] }
  0x13   :  { %s30_s19 = sshll.u32 %s90_s18, 4  ;;  %v22_v1 = vrot.slane %v21_v0, 7  ;;  %s31_s19 = int_to_ptr.vmem [resolvable:$true] %s30_s19 }
  0x14   :  { %s63_s20 = scalar_lea.vmem %s31_s19, 128  ;;  %p68_p9 = scmp.lt.s32.totalorder %s31_s19, %s31_s19 }
  0x15   :  { %23 = vst [vmem:[#allocation5] sm:$0xff] %v22_v1  ;;  %p64_p8 = scmp.ne.s32.totalorder %s31_s19, %s63_s20  ;;  %p69_p10 = scmp.lt.s32.totalorder %s63_s20, %s63_s20 }
  0x17   :  { %p70_p11 = por %p69_p10, %p68_p9 }
  0x19   :  { %p71_p12 = pnand %p70_p11, %p64_p8 }
  0x1b   :  { %74 = shalt.err (!%p71_p12)
}
  0x1c   :  { %s75_s23 = scalar_lea.hbm %s126_s1, 128 }
  0x1d   :  { %p76_p13 = scmp.ne.s32.totalorder %s126_s1, %s75_s23  ;;  %p79_p0 = scmp.lt.u32.totalorder %s75_s23, %s126_s1 }
  0x1f   :  { %p81_p1 = pnand %p79_p0, %p76_p13 }
  0x21   :  { %84 = shalt.err (!%p81_p1)
}
  0x22   :  { %33 = dma.vmem_to_hbm [thread:$0]  %s31_s19, 128, %s126_s1, [#allocation4]  }
  0x23   :  { %87 = dma.done.wait [#allocation4], 128  }
  0x24   :  { %88 = vsyncadd [#allocation4], 4294967168 }
  0x25   :  { %37 = vsyncpa [#allocation3], 1 }
  0x26   :  { %38 = vsyncpa [#allocation4], 1 }

// kernel: tpu_custom_call.1
= control target key start
LH: loop header
LB: loop body
LE: loop exit
PB: predicated region body
PF: predicated region fallthrough
CT: control target
= control target key end

     0   :  { %12 = vsyncpa [#allocation3], 0  ;;  %s1495_s0 = inlined_call_operand.hbm [shape: bf16[16,32], index: 0, kind: input, shape index: {}]   ;;  %s1496_s1 = inlined_call_operand.hbm [shape: f32[16,128], index: 1, kind: input, shape index: {}]   ;;  %s1497_s2 = inlined_call_operand.hbm [shape: bf16[32,128], index: 2, kind: input, shape index: {}]   ;;  %s1498_s3 = inlined_call_operand.vmem [shape: f32[3,128], index: 3, kind: input, shape index: {}]   ;;  %s1499_s4 = inlined_call_operand.vmem [shape: s32[3,128], index: 4, kind: input, shape index: {}]   ;;  %s1500_s5 = inlined_call_operand.hbm [shape: f32[16,128], index: 5, kind: output, shape index: {0}]   ;;  %s1501_s6 = inlined_call_operand.hbm [shape: f32[16,128], index: 6, kind: output, shape index: {1}]  }
   0x1   :  { %13 = vsyncpa [#allocation6], 0 }
   0x2   :  { %14 = vsyncpa [#allocation4], 0 }
   0x3   :  { %15 = vsyncpa [#allocation10], 0  ;;  %s841_s21 = smov [#allocation5]   ;;  %s723_s25 = scalar_lea.hbm %s1496_s1, 256 }
   0x4   :  { %s33_s22 = sshll.u32 %s841_s21, 4  ;;  %p724_p0 = scmp.ne.s32.totalorder %s1496_s1, %s723_s25  ;;  %s34_s22 = int_to_ptr.vmem [resolvable:$true] %s33_s22 }
   0x5   :  { %p727_p1 = scmp.lt.u32.totalorder %s723_s25, %s1496_s1 }
   0x7   :  { %p729_p2 = pnand %p727_p1, %p724_p0 }
   0x9   :  { %732 = shalt.err (!%p729_p2)
}
   0xa   :  { %s733_s30 = scalar_lea.vmem %s34_s22, 256  ;;  %p738_p4 = scmp.lt.s32.totalorder %s34_s22, %s34_s22 }
   0xb   :  { %p734_p3 = scmp.ne.s32.totalorder %s34_s22, %s733_s30  ;;  %p739_p5 = scmp.lt.s32.totalorder %s733_s30, %s733_s30 }
   0xd   :  { %p740_p6 = por %p739_p5, %p738_p4 }
   0xf   :  { %p741_p7 = pnand %p740_p6, %p734_p3 }
  0x11   :  { %744 = shalt.err (!%p741_p7)
}
  0x12   :  { %s842_s7 = smov 128   ;;  %s843_s8 = smov 8  }
  0x13   :  { %39 = dma.hbm_to_vmem [thread:$0]  %s1496_s1, 256, %s34_s22, [#allocation6], %s842_s7, %s842_s7, %s843_s8  }
  0x14   :  { %s844_s11 = smov [#allocation2]   ;;  %s745_s15 = scalar_lea.hbm %s1495_s0, 128 }
  0x15   :  { %s21_s12 = sshll.u32 %s844_s11, 4  ;;  %p746_p8 = scmp.ne.s32.totalorder %s1495_s0, %s745_s15  ;;  %s22_s12 = int_to_ptr.vmem [resolvable:$true] %s21_s12 }
  0x16   :  { %p749_p9 = scmp.lt.u32.totalorder %s745_s15, %s1495_s0 }
  0x18   :  { %p751_p10 = pnand %p749_p9, %p746_p8 }
  0x1a   :  { %754 = shalt.err (!%p751_p10)
}
  0x1b   :  { %s755_s20 = scalar_lea.vmem %s22_s12, 128  ;;  %p760_p12 = scmp.lt.s32.totalorder %s22_s12, %s22_s12 }
  0x1c   :  { %p756_p11 = scmp.ne.s32.totalorder %s22_s12, %s755_s20  ;;  %p761_p13 = scmp.lt.s32.totalorder %s755_s20, %s755_s20 }
  0x1e   :  { %p762_p0 = por %p761_p13, %p760_p12 }
  0x20   :  { %p763_p1 = pnand %p762_p0, %p756_p11 }
  0x22   :  { %766 = shalt.err (!%p763_p1)
}
  0x23   :  { %s845_s1 = smov 64   ;;  %s846_s21 = smov 4  }
  0x24   :  { %27 = dma.hbm_to_vmem [thread:$0]  %s1495_s0, 128, %s22_s12, [#allocation3], %s845_s1, %s845_s1, %s846_s21  }
  0x25   :  { %s847_s24 = smov [#allocation7]   ;;  %s767_s28 = scalar_lea.hbm %s1497_s2, 256 }
  0x26   :  { %s45_s25 = sshll.u32 %s847_s24, 4  ;;  %p768_p2 = scmp.ne.s32.totalorder %s1497_s2, %s767_s28  ;;  %s46_s25 = int_to_ptr.vmem [resolvable:$true] %s45_s25 }
  0x27   :  { %p771_p3 = scmp.lt.u32.totalorder %s767_s28, %s1497_s2 }
  0x29   :  { %p773_p4 = pnand %p771_p3, %p768_p2 }
  0x2b   :  { %776 = shalt.err (!%p773_p4)
}
  0x2c   :  { %s777_s11 = scalar_lea.vmem %s46_s25, 256  ;;  %p782_p6 = scmp.lt.s32.totalorder %s46_s25, %s46_s25 }
  0x2d   :  { %p778_p5 = scmp.ne.s32.totalorder %s46_s25, %s777_s11  ;;  %p783_p7 = scmp.lt.s32.totalorder %s777_s11, %s777_s11 }
  0x2f   :  { %p784_p8 = por %p783_p7, %p782_p6 }
  0x31   :  { %p785_p9 = pnand %p784_p8, %p778_p5 }
  0x33   :  { %788 = shalt.err (!%p785_p9)
}
  0x34   :  { %51 = dma.hbm_to_vmem [thread:$0]  %s1497_s2, 256, %s46_s25, [#allocation6], %s845_s1, %s845_s1, %s846_s21  }
  0x35   :  { %833 = dma.done.wait [#allocation3], 128  }
  0x36   :  { %834 = vsyncadd [#allocation3], 4294967168 }
  0x37   :  { %835 = dma.done.wait [#allocation6], 512  }
  0x38   :  { %836 = vsyncadd [#allocation6], 4294966784  ;;  %v848_v0 = vmov 0.0   ;;  %vm849_vm0 = vmmov 0   ;;  %v704_v1 = vld [vmem:[#allocation7] sm:$0xff]   ;;  %v705_v2 = vld [vmem:[#allocation7 + $0x8] sm:$0xff]   ;;  %v138_v16 = vlaneseq }
  0x39   :  { %684 = vmatprep.subr.bf16.mxu0 %v848_v0  ;;  %688 = vmatprep.mubr.msk.bf16.mxu0 %vm849_vm0, %v848_v0  ;;  %v706_v3 = vld [vmem:[#allocation2] sm:$0xff]   ;;  %vm91_vm1 = vcmask 261120   ;;  %vm177_vm2 = vcmask 1042432   ;;  %v850_v37 = vmov 0   ;;  %vm1503_vm11 = vcmask 1040384   ;;  %s852_s16 = smov [#allocation8]  }
  0x3a   :  { %685 = vmatpush3.bf16.msra.mxu0 %v704_v1  ;;  %v176_v4 = vld [vmem:[%s1498_s3] sm:$0x7]  ;;  %v936_v20 = vshrl.u32 %v138_v16, 7  ;;  %vm1505_vm14 = vcmask 1041408   ;;  %s851_s3 = smov [#allocation9]   ;;  %s647_s17 = sshll.u32 %s852_s16, 4  ;;  %s1458_s17 = int_to_ptr.vmem [resolvable:$true] %s647_s17 }
  0x3b   :  { %686 = vmatprep.subr.bf16.mxu0 %v848_v0  ;;  %v178_v5 = vsel %vm177_vm2, %v176_v4, -inf  ;;  %v197_v15 = vld [vmem:[%s1499_s4] sm:$0x7]  ;;  %s659_s4 = sshll.u32 %s851_s3, 4  ;;  %s660_s4 = int_to_ptr.vmem [resolvable:$true] %s659_s4 }
  0x3c   :  { %v179_v6 = vrot.slane %v178_v5, 4  ;;  %v199_v18 = vadd.s32 1, %v197_v15  ;;  %v198_v23 = vshra.s32 %v197_v15, 1  ;;  %v939_v24 = vsub.s32 0, %v936_v20  ;;  %s789_s18 = scalar_lea.vmem %s660_s4, 256  ;;  %p794_p11 = scmp.lt.s32.totalorder %s660_s4, %s660_s4 }
  0x3d   :  { %v140_v29 = vadd.s32 8, %v936_v20  ;;  %v945_v34 = vsub.s32 1, %v936_v20  ;;  %v951_v43 = vsub.s32 2, %v936_v20  ;;  %v244_v1 = vsub.s32 7, %v936_v20  ;;  %p790_p10 = scmp.ne.s32.totalorder %s660_s4, %s789_s18  ;;  %p795_p12 = scmp.lt.s32.totalorder %s789_s18, %s789_s18 }
  0x3e   :  { %687 = vmatpush3.bf16.msra.mxu0 %v705_v2  ;;  %v180_v7 = vmax.f32 %v178_v5, %v179_v6  ;;  %v200_v21 = vshra.s32 %v199_v18, 1  ;;  %v344_v30 = vrot.slane %v198_v23, %v939_v24  ;;  %v236_v33 = vshra.s32 %v198_v23, 1 }
  0x3f   :  { %v201_v36 = vand.u32 1, %v198_v23  ;;  %v279_v39 = vshra.s32 %v198_v23, 2  ;;  %v473_v48 = vrot.slane %v198_v23, %v945_v34  ;;  %v317_v52 = vshra.s32 %v198_v23, 3  ;;  %p796_p13 = por %p795_p12, %p794_p11 }
  0x40   :  { %v181_v8 = vrot.slane %v180_v7, 2  ;;  %v203_v25 = vand.u32 1, %v200_v21  ;;  %v239_v26 = vshra.s32 %v200_v21, 1  ;;  %v680_v27 = vadd.s32 4294967295, %v200_v21 }
  0x41   :  { %689 = vmatmul.mubr.msk.bf16.vlgmr.msra.gmra.mrb[0].mxu0 %vm91_vm1, %v706_v3  ;;  %v282_v40 = vshra.s32 %v200_v21, 2  ;;  %v346_v41 = vadd.s32 %v344_v30, %v140_v29  ;;  %v237_v44 = vand.u32 1, %v236_v33  ;;  %v320_v45 = vshra.s32 %v200_v21, 3  ;;  %p797_p0 = pnand %p796_p13, %p790_p10 }
  0x42   :  { %v182_v9 = vmax.f32 %v180_v7, %v181_v8  ;;  %vm204_vm3 = vcmp.gt.s32.totalorder %v203_v25, 0  ;;  %v240_v31 = vand.u32 1, %v239_v26  ;;  %v355_v32 = vrot.slane %v680_v27, %v939_v24 }
  0x43   :  { %v948_v38 = vsel %vm204_vm3, 1, %v850_v37  ;;  %vm202_vm5 = vcmp.gt.s32.totalorder %v201_v36, 0  ;;  %v280_v50 = vand.u32 1, %v279_v39  ;;  %v283_v51 = vand.u32 1, %v282_v40 }
  0x44   :  { %v183_v10 = vrot.slane %v182_v9, 1  ;;  %vm241_vm4 = vcmp.gt.s32.totalorder %v240_v31, 0  ;;  %v357_v42 = vsub.s32 %v140_v29, %v355_v32  ;;  %v232_v46 = vrot.slane %v948_v38, %v939_v24 }
  0x45   :  { %v957_v49 = vsel %vm241_vm4, 1, %v850_v37  ;;  %v390_v53 = vrot.slane %v948_v38, %v945_v34  ;;  %v518_v54 = vrot.slane %v948_v38, %v951_v43  ;;  %vm349_vm6 = vcmp.lt.s32.totalorder %v346_v41, 15 }
  0x46   :  { %v184_v11 = vmax.f32 %v182_v9, %v183_v10  ;;  %vm360_vm7 = vcmp.gt.s32.totalorder %v357_v42, 0  ;;  %v964_v55 = vsel %vm202_vm5, 1, %v850_v37  ;;  %vm238_vm8 = vcmp.gt.s32.totalorder %v237_v44, 0 }
  0x47   :  { %v321_v56 = vand.u32 1, %v320_v45  ;;  %v483_v57 = vrot.slane %v680_v27, %v945_v34  ;;  %v275_v58 = vrot.slane %v957_v49, %v939_v24  ;;  %v420_v59 = vrot.slane %v957_v49, %v945_v34 }
  0x48   :  { %v185_v12 = vsub.f32 %v176_v4, %v184_v11  ;;  %v601_v61 = vrot.slane %v198_v23, %v951_v43  ;;  %vm281_vm9 = vcmp.gt.s32.totalorder %v280_v50, 0  ;;  %vm284_vm10 = vcmp.gt.s32.totalorder %v283_v51, 0  ;;  %v1000_v23 = vld [vmem:[#allocation5 + $0x8] sm:$0xff] }
  0x49   :  { %v318_v62 = vand.u32 1, %v317_v52  ;;  %v611_v63 = vrot.slane %v680_v27, %v951_v43  ;;  %v218_v0 = vrot.slane %v964_v55, %v939_v24  ;;  %v977_v2 = vsel %vm238_vm8, 1, %v850_v37 }
  0x4a   :  { %v186_v13 = vmul.f32 1.442695, %v185_v12  ;;  %v350_v3 = vsel %vm349_vm6, %v346_v41, 15  ;;  %vm322_vm12 = vcmp.gt.s32.totalorder %v321_v56, 0  ;;  %v361_v4 = vsel %vm360_vm7, %v357_v42, 0 }
  0x4b   :  { %v475_v5 = vadd.s32 %v473_v48, %v140_v29  ;;  %v485_v6 = vsub.s32 %v140_v29, %v483_v57  ;;  %v982_v7 = vsel %vm281_vm9, 1, %v850_v37  ;;  %v985_v8 = vsel %vm284_vm10, 1, %v850_v37 }
  0x4c   :  { %707 = vpow2.f32 %v186_v13  ;;  %v603_v9 = vadd.s32 %v601_v61, %v140_v29  ;;  %vm319_vm13 = vcmp.gt.s32.totalorder %v318_v62, 0  ;;  %v613_v10 = vsub.s32 %v140_v29, %v611_v63  ;;  %v989_v13 = vld [vmem:[#allocation5] sm:$0xff] }
  0x4d   :  { %v345_v11 = vadd.s32 %v344_v30, %v936_v20  ;;  %v356_v12 = vsub.s32 %v936_v20, %v355_v32  ;;  %v259_v15 = vrot.slane %v977_v2, %v939_v24  ;;  %v994_v16 = vsel %vm322_vm12, 1, %v850_v37 }
  0x4e   :  { %v383_v18 = vrot.slane %v964_v55, %v945_v34  ;;  %vm478_vm15 = vcmp.lt.s32.totalorder %v475_v5, 15  ;;  %vm488_vm0 = vcmp.gt.s32.totalorder %v485_v6, 0  ;;  %v484_v21 = vsub.s32 %v936_v20, %v483_v57 }
  0x4f   :  { %v297_v25 = vrot.slane %v982_v7, %v939_v24  ;;  %v313_v26 = vrot.slane %v985_v8, %v939_v24  ;;  %v1008_v27 = vsel %vm319_vm13, 1, %v850_v37  ;;  %vm606_vm1 = vcmp.lt.s32.totalorder %v603_v9, 15 }
  0x50   :  { %vm347_vm3 = vcmp.lt.s32.totalorder %v345_v11, 15  ;;  %vm358_vm4 = vcmp.gt.s32.totalorder %v356_v12, 0  ;;  %v335_v31 = vrot.slane %v994_v16, %v939_v24  ;;  %v479_v33 = vsel %vm478_vm15, %v475_v5, 15 }
  0x51   :  { %vm486_vm6 = vcmp.gt.s32.totalorder %v484_v21, 0  ;;  %vm1502_vm7 = vcmask 1043456   ;;  %v607_v40 = vsel %vm606_vm1, %v603_v9, 15  ;;  %v348_v42 = vsel %vm347_vm3, %v345_v11, 15 }
  0x52   :  { %v359_v44 = vsel %vm358_vm4, %v356_v12, 0  ;;  %v612_v50 = vsub.s32 %v936_v20, %v611_v63  ;;  %vm1031_vm10 = vcmp.eq.s32.totalorder %v232_v46, 1  ;;  %vm1038_vm12 = vcmp.eq.s32.totalorder %v390_v53, 1 }
  0x53   :  { %v362_v63 = vsub.s32 %v348_v42, %v359_v44  ;;  %vm1045_vm13 = vcmp.eq.s32.totalorder %v518_v54, 1  ;;  %v457_v53 = vrot.slane %v1008_v27, %v945_v34  ;;  %vm1506_vm15 = vcmask 1046528  }
  0x54   :  { %vm614_vm9 = vcmp.gt.s32.totalorder %v612_v50, 0  ;;  %vm1069_vm1 = vcmp.eq.s32.totalorder %v420_v59, 1  ;;  %v1525_v42 = vmov 0  ;;  %v464_v44 = vrot.slane %v994_v16, %v945_v34 }
  0x55   :  { %v364_v38 = vadd.s32 1, %v362_v63  ;;  %vm1092_vm3 = vcmp.eq.s32.totalorder %v383_v18, 1  ;;  %vm1165_vm4 = vcmp.eq.s32.totalorder %v297_v25, 1 }
  0x56   :  { %v930_v14 = vpop.eup %707 }
  0x57   :  { %v188_v17 = vsel %vm177_vm2, %v930_v14, 0.0  ;;  %vm616_vm2 = vcmp.gt.s32.totalorder %v613_v10, 0 }
  0x58   :  { %v189_v19 = vrot.slane %v188_v17, 4  ;;  %v617_v41 = vsel %vm616_vm2, %v613_v10, 0  ;;  %vm1076_vm2 = vcmp.eq.s32.totalorder %v218_v0, 1  ;;  %v1527_v0 = vmov 0 }
  0x59   :  { %v619_v5 = vsub.s32 %v607_v40, %v617_v41  ;;  %v1526_v42 = vsel %vm1076_vm2, 4294967295, %v1525_v42  ;;  %v1528_v0 = vsel %vm1092_vm3, 4294967295, %v1527_v0 }
  0x5a   :  { %v190_v22 = vadd.f32 %v189_v19, %v188_v17  ;;  %v363_v17 = vsub.s32 %v350_v3, %v361_v4  ;;  %v474_v19 = vadd.s32 %v473_v48, %v936_v20  ;;  %v602_v48 = vadd.s32 %v601_v61, %v936_v20 }
  0x5b   :  { %v327_v3 = vrot.slane %v1008_v27, %v939_v24  ;;  %v405_v4 = vrot.slane %v977_v2, %v945_v34  ;;  %v435_v61 = vrot.slane %v982_v7, %v945_v34 }
  0x5c   :  { %v191_v28 = vrot.slane %v190_v22, 2  ;;  %v365_v32 = vadd.s32 1, %v363_v17  ;;  %vm476_vm5 = vcmp.lt.s32.totalorder %v474_v19, 15  ;;  %vm604_vm8 = vcmp.lt.s32.totalorder %v602_v48, 15 }
  0x5d   :  { %v477_v57 = vsel %vm476_vm5, %v474_v19, 15  ;;  %v605_v54 = vsel %vm604_vm8, %v602_v48, 15  ;;  %vm1120_vm8 = vcmp.eq.s32.totalorder %v313_v26, 1 }
  0x5e   :  { %v192_v35 = vadd.f32 %v191_v28, %v190_v22  ;;  %v367_v10 = vcvt.s32.f32 %v365_v32  ;;  %v621_v32 = vadd.s32 1, %v619_v5 }
  0x60   :  { %v193_v47 = vrot.slane %v192_v35, 1  ;;  %v623_v48 = vcvt.s32.f32 %v621_v32 }
  0x62   :  { %v194_v60 = vadd.f32 %v193_v47, %v192_v35  ;;  %v489_v35 = vsel %vm488_vm0, %v485_v6, 0  ;;  %vm1062_vm0 = vcmp.eq.s32.totalorder %v275_v58, 1 }
  0x63   :  { %v491_v56 = vsub.s32 %v479_v33, %v489_v35  ;;  %v615_v35 = vsel %vm614_vm9, %v612_v50, 0  ;;  %vm1139_vm9 = vcmp.eq.s32.totalorder %v405_v4, 1 }
  0x64   :  { %709 = vrcp.f32 %v194_v60  ;;  %v487_v60 = vsel %vm486_vm6, %v484_v21, 0  ;;  %v618_v50 = vsub.s32 %v605_v54, %v615_v35  ;;  %vm1113_vm6 = vcmp.eq.s32.totalorder %v259_v15, 1 }
  0x65   :  { %v490_v11 = vsub.s32 %v477_v57, %v487_v60  ;;  %711 = vrcp.f32 %v367_v10  ;;  %v366_v57 = vcvt.s32.f32 %v364_v38  ;;  %v563_v10 = vrot.slane %v982_v7, %v951_v43 }
  0x66   :  { %v592_v15 = vrot.slane %v994_v16, %v951_v43 }
  0x6e   :  { %v710_v51 = vpop.eup %709 }
  0x6f   :  { %v1050_v46 = vmul.f32 %v710_v51, %v930_v14  ;;  %v511_v14 = vrot.slane %v964_v55, %v951_v43  ;;  %v548_v55 = vrot.slane %v957_v49, %v951_v43  ;;  %v578_v49 = vrot.slane %v985_v8, %v951_v43 }
  0x71   :  { %v1082_v58 = vrot.slane %v1050_v46, %v939_v24  ;;  %vm1103_vm5 = vcmp.eq.s32.totalorder %v511_v14, 1  ;;  %v1541_v14 = vmov 0 }
 0x114   :  { %v129_v22 = vpop.f32.mrb[0].mxu0 }
 0x115   :  { %v136_v28 = vsub.f32 %v989_v13, %v129_v22  ;;  %v690_v29 = vpop.f32.mrb[1].mxu0 }
 0x116   :  { %v132_v30 = vpop.f32.mrb[2].mxu0 }
 0x117   :  { %v144_v36 = vrot.slane %v136_v28, 7  ;;  %v137_v37 = vsub.f32 %v1000_v23, %v132_v30  ;;  %v691_v39 = vpop.f32.mrb[3].mxu0  ;;  %v450_v30 = vrot.slane %v985_v8, %v945_v34 }
 0x118   :  { %v492_v39 = vadd.s32 1, %v490_v11  ;;  %v1130_v11 = vadd.s32 1, %v618_v50 }
 0x119   :  { %v149_v45 = vsel %vm1503_vm11, 0.0, %v144_v36  ;;  %v145_v47 = vrot.slane %v137_v37, 7 }
 0x11a   :  { %v150_v52 = vadd.f32 %v149_v45, %v136_v28  ;;  %v493_v28 = vadd.s32 1, %v491_v56  ;;  %v533_v56 = vrot.slane %v977_v2, %v951_v43  ;;  %v494_v18 = vcvt.s32.f32 %v492_v39 }
 0x11b   :  { %v146_v62 = vsel %vm1503_vm11, %v144_v36, %v145_v47 }
 0x11c   :  { %v155_v6 = vrot.slane %v150_v52, 6  ;;  %v151_v9 = vadd.f32 %v146_v62, %v137_v37  ;;  %v495_v45 = vcvt.s32.f32 %v493_v28  ;;  %v1529_v62 = vmov 0 }
 0x11d   :  { %v1530_v62 = vsel %vm1103_vm5, 4294967295, %v1529_v62 }
 0x11e   :  { %v160_v12 = vsel %vm1505_vm14, 0.0, %v155_v6  ;;  %v156_v22 = vrot.slane %v151_v9, 6  ;;  %713 = vrcp.f32 %v495_v45  ;;  %v1184_v45 = vpop.eup %711 }
 0x11f   :  { %v161_v29 = vadd.f32 %v160_v12, %v150_v52  ;;  %v1098_v52 = vrot.slane %v1050_v46, %v945_v34  ;;  %715 = vrcp.f32 %v623_v48 }
 0x120   :  { %v157_v33 = vsel %vm1505_vm14, %v155_v6, %v156_v22  ;;  %717 = vrcp.f32 %v366_v57 }
 0x121   :  { %v166_v36 = vrot.slane %v161_v29, 4  ;;  %v162_v37 = vadd.f32 %v157_v33, %v151_v9  ;;  %v1531_v9 = vmov 0  ;;  %719 = vrcp.f32 %v494_v18 }
 0x122   :  { %v1532_v9 = vsel %vm1113_vm6, 4294967295, %v1531_v9 }
 0x123   :  { %v171_v59 = vsel %vm1502_vm7, 0.0, %v166_v36  ;;  %v167_v47 = vrot.slane %v162_v37, 4 }
 0x124   :  { %v1087_v51 = vadd.f32 %v171_v59, %v161_v29  ;;  %v585_v29 = vrot.slane %v1008_v27, %v951_v43 }
 0x125   :  { %v168_v60 = vsel %vm1502_vm7, %v166_v36, %v167_v47  ;;  %vm1143_vm7 = vcmp.eq.s32.totalorder %v450_v30, 1  ;;  %v1543_v47 = vmov 0 }
 0x126   :  { %v222_v5 = vrot.slane %v1087_v51, 7  ;;  %v173_v6 = vadd.f32 %v168_v60, %v162_v37 }
 0x128   :  { %v227_v12 = vsel %vm1503_vm11, 0.0, %v222_v5  ;;  %v1134_v26 = vadd.f32 %v173_v6, %v1087_v51  ;;  %vm1178_vm11 = vcmp.eq.s32.totalorder %v327_v3, 1 }
 0x129   :  { %v234_v32 = vsel %vm1031_vm10, %v227_v12, %v1087_v51  ;;  %v392_v2 = vsel %vm1038_vm12, %v227_v12, %v1087_v51  ;;  %v1158_v4 = vsel %vm1045_vm13, %v227_v12, %v1087_v51  ;;  %v1542_v14 = vsel %vm1178_vm11, 4294967295, %v1541_v14 }
 0x12a   :  { %v265_v30 = vrot.slane %v234_v32, 6  ;;  %v411_v33 = vrot.slane %v392_v2, 6  ;;  %v539_v38 = vrot.slane %v1158_v4, 6  ;;  %v1513_v54 = vrot.slane %v1134_v26, 1 }
 0x12b   :  { %v223_v36 = vrot.slane %v1134_v26, 7  ;;  %v1173_v37 = vrot.slane %v1134_v26, %v244_v1  ;;  %vm1200_vm11 = vcmp.eq.s32.totalorder %v435_v61, 1 }
 0x12c   :  { %v270_v59 = vsel %vm1505_vm14, 0.0, %v265_v30  ;;  %v416_v20 = vsel %vm1505_vm14, 0.0, %v411_v33  ;;  %v1191_v1 = vsel %vm1505_vm14, 0.0, %v539_v38  ;;  %v213_v3 = vsel %vm1506_vm15, %v1513_v54, %v1134_v26 }
 0x12d   :  { %v1544_v47 = vsel %vm1200_vm11, 4294967295, %v1543_v47  ;;  %v277_v48 = vsel %vm1062_vm0, %v270_v59, %v234_v32  ;;  %v422_v50 = vsel %vm1069_vm1, %v416_v20, %v392_v2  ;;  %v1211_v57 = vsel %vm1076_vm2, %v213_v3, %v1134_v26 }
 0x12e   :  { %vm1545_vm14 = vcmask 1040384   ;;  %vm1217_vm15 = vcmp.eq.s32.totalorder %v457_v53, 1  ;;  %vm1221_vm11 = vcmp.eq.s32.totalorder %v533_v56, 1  ;;  %v303_v18 = vrot.slane %v277_v48, 4 }
 0x12f   :  { %v224_v60 = vsel %vm1545_vm14, %v222_v5, %v223_v36  ;;  %v441_v6 = vrot.slane %v422_v50, 4  ;;  %v1512_v32 = vrot.slane %v1211_v57, 2  ;;  %vm1232_vm14 = vcmp.eq.s32.totalorder %v335_v31, 1 }
 0x130   :  { %v235_v12 = vsel %vm1031_vm10, %v224_v60, %v1134_v26  ;;  %vm1236_vm2 = vcmp.eq.s32.totalorder %v548_v55, 1  ;;  %v1552_v53 = vmov 0  ;;  %v1243_v5 = vsel %vm1092_vm3, %v213_v3, %v1134_v26  ;;  %v714_v55 = vpop.eup %713 }
 0x131   :  { %v1553_v53 = vsel %vm1236_vm2, 4294967295, %v1552_v53  ;;  %v266_v56 = vrot.slane %v235_v12, 6  ;;  %v393_v17 = vsel %vm1038_vm12, %v224_v60, %v1134_v26  ;;  %vm1251_vm10 = vcmp.eq.s32.totalorder %v464_v44, 1  ;;  %v1266_v44 = vpop.eup %715 }
 0x132   :  { %v1258_v31 = vsel %vm1103_vm5, %v213_v3, %v1134_v26  ;;  %vm1556_vm3 = vcmask 1045504   ;;  %vm1557_vm2 = vcmask 1043456   ;;  %v397_v36 = vrot.slane %v1243_v5, 2  ;;  %v1283_v39 = vpop.eup %717 }
 0x133   :  { %v254_v2 = vsel %vm1556_vm3, %v1512_v32, %v1173_v37  ;;  %v308_v19 = vsel %vm1557_vm2, 0.0, %v303_v18  ;;  %v412_v34 = vrot.slane %v393_v17, 6  ;;  %vm1558_vm12 = vcmask 1041408   ;;  %vm1559_vm5 = vmmov %vm1557_vm2 }
 0x134   :  { %v1271_v59 = vsel %vm1113_vm6, %v254_v2, %v1211_v57  ;;  %v267_v20 = vsel %vm1558_vm12, %v265_v30, %v266_v56  ;;  %v1276_v3 = vsel %vm1120_vm8, %v308_v19, %v277_v48  ;;  %v446_v32 = vsel %vm1559_vm5, 0.0, %v441_v6 }
 0x135   :  { %vm1279_vm3 = vcmp.eq.s32.totalorder %v563_v10, 1  ;;  %v278_v54 = vsel %vm1062_vm0, %v267_v20, %v235_v12  ;;  %v288_v2 = vrot.slane %v1271_v59, 4  ;;  %vm1562_vm2 = vcmask 1045504   ;;  %v1297_v10 = vpop.eup %719 }
 0x136   :  { %v401_v30 = vsel %vm1562_vm2, %v397_v36, %v1173_v37  ;;  %v413_v48 = vsel %vm1558_vm12, %v411_v33, %v412_v34  ;;  %vm1293_vm6 = vcmp.eq.s32.totalorder %v585_v29, 1  ;;  %v304_v19 = vrot.slane %v278_v54, 4 }
 0x137   :  { %v1302_v40 = vsel %vm1139_vm9, %v401_v30, %v1243_v5  ;;  %v423_v12 = vsel %vm1069_vm1, %v413_v48, %v393_v17  ;;  %v1308_v20 = vsel %vm1143_vm7, %v446_v32, %v422_v50  ;;  %vm1313_vm0 = vcmp.eq.s32.totalorder %v578_v49, 1  ;;  %vm1567_vm1 = vmmov %vm1559_vm5 }
 0x138   :  { %v292_v33 = vsel %vm1559_vm5, %v288_v2, %v1173_v37  ;;  %v427_v34 = vrot.slane %v1302_v40, 4  ;;  %v442_v41 = vrot.slane %v423_v12, 4  ;;  %v521_v50 = vsel %vm1045_vm13, %v224_v60, %v1134_v26  ;;  %vm1569_vm13 = vmmov %vm1567_vm1 }
 0x139   :  { %v300_v8 = vsel %vm1165_vm4, %v292_v33, %v1271_v59  ;;  %v305_v49 = vsel %vm1567_vm1, %v303_v18, %v304_v19  ;;  %v525_v32 = vrot.slane %v1258_v31, 2  ;;  %v540_v17 = vrot.slane %v521_v50, 6  ;;  %vm1570_vm12 = vmmov %vm1567_vm1 }
 0x13a   :  { %v316_v30 = vsel %vm1120_vm8, %v305_v49, %v278_v54  ;;  %vm1568_vm2 = vnez %v1542_v14  ;;  %v431_v21 = vsel %vm1569_vm13, %v427_v34, %v1173_v37  ;;  %v443_v60 = vsel %vm1570_vm12, %v441_v6, %v442_v41 }
 0x13b   :  { %v330_v48 = vsel %vm1568_vm2, %v1173_v37, %v300_v8  ;;  %vm1343_vm5 = vcmp.eq.s32.totalorder %v592_v15, 1  ;;  %v338_v63 = vsel %vm1232_vm14, %v1276_v3, %v316_v30  ;;  %vm1573_vm8 = vnez %v1544_v47 }
 0x13c   :  { %v438_v54 = vsel %vm1573_vm8, %v431_v21, %v1302_v40  ;;  %v453_v19 = vsel %vm1143_vm7, %v443_v60, %v423_v12  ;;  %vm1574_vm1 = vcmask 1045504   ;;  %v340_v33 = vsub.f32 %v330_v48, %v338_v63 }
 0x13d   :  { %v529_v6 = vsel %vm1574_vm1, %v525_v32, %v1173_v37  ;;  %v460_v16 = vsel %vm1217_vm15, %v1173_v37, %v438_v54  ;;  %v467_v15 = vsel %vm1251_vm10, %v1308_v20, %v453_v19  ;;  %vm1575_vm7 = vcmask 1041408  }
 0x13e   :  { %v536_v41 = vsel %vm1221_vm11, %v529_v6, %v1258_v31  ;;  %v469_v49 = vsub.f32 %v460_v16, %v467_v15  ;;  %v541_v28 = vsel %vm1575_vm7, %v539_v38, %v540_v17  ;;  %vm1576_vm13 = vnez %v1553_v53 }
 0x13f   :  { %v550_v12 = vsel %vm1576_vm13, %v1191_v1, %v1158_v4  ;;  %v555_v30 = vrot.slane %v536_v41, 4  ;;  %v371_v48 = vmul.f32 %v1184_v45, %v340_v33  ;;  %v551_v21 = vsel %vm1576_vm13, %v541_v28, %v521_v50 }
 0x140   :  { %v569_v60 = vrot.slane %v550_v12, 4  ;;  %v1577_v63 = vrot.slane %v1134_v26, 1  ;;  %v1578_v31 = vrot.slane %v1087_v51, 1  ;;  %vm1579_vm12 = vcmask 1046528  }
 0x141   :  { %v499_v6 = vmul.f32 %v714_v55, %v469_v49  ;;  %vm1580_vm1 = vcmask 1043456   ;;  %v570_v17 = vrot.slane %v551_v21, 4  ;;  %vm1581_vm7 = vnez %v1526_v42 }
 0x142   :  { %v210_v19 = vsel %vm1579_vm12, %v1578_v31, %v1577_v63  ;;  %v559_v38 = vsel %vm1580_vm1, %v555_v30, %v1173_v37  ;;  %v377_v45 = vmul.f32 %v1082_v58, %v371_v48  ;;  %vm1582_vm13 = vmmov %vm1580_vm1  ;;  %v1584_v16 = vcvt.s32.f32 %v1130_v11 }
 0x143   :  { %v220_v4 = vsel %vm1581_vm7, %v210_v19, %v1087_v51  ;;  %v566_v1 = vsel %vm1279_vm3, %v559_v38, %v536_v41  ;;  %v574_v26 = vsel %vm1582_vm13, 0.0, %v569_v60  ;;  %v505_v50 = vmul.f32 %v1098_v52, %v499_v6  ;;  %vm1583_vm12 = vmmov %vm1580_vm1 }
 0x144   :  { %v249_v53 = vrot.slane %v220_v4, 2  ;;  %v571_v55 = vsel %vm1583_vm12, %v569_v60, %v570_v17  ;;  %v588_v33 = vsel %vm1293_vm6, %v1173_v37, %v566_v1  ;;  %721 = vrcp.f32 %v1584_v16 }
 0x145   :  { %v580_v42 = vsel %vm1313_vm0, %v574_v26, %v550_v12  ;;  %v581_v15 = vsel %vm1313_vm0, %v571_v55, %v551_v21  ;;  %v1585_v41 = vrot.slane %v1211_v57, 2  ;;  %vm1586_vm1 = vcmask 1045504  }
 0x146   :  { %vm1587_vm7 = vnez %v1528_v0  ;;  %v507_v48 = vadd.f32 %v505_v50, %v377_v45  ;;  %v595_v37 = vsel %vm1343_vm5, %v580_v42, %v581_v15  ;;  %vm1588_vm13 = vnez %v1532_v9  ;;  %vm1590_vm12 = vmmov %vm1586_vm1 }
 0x147   :  { %v251_v49 = vsel %vm1586_vm1, %v249_v53, %v1585_v41  ;;  %v385_v28 = vsel %vm1587_vm7, %v210_v19, %v1087_v51  ;;  %v597_v12 = vsub.f32 %v588_v33, %v595_v37  ;;  %v631_v29 = vrot.slane %v1050_v46, %v951_v43  ;;  %vm1592_vm7 = vmmov %vm1590_vm12 }
 0x148   :  { %v261_v11 = vsel %vm1588_vm13, %v251_v49, %v220_v4  ;;  %v396_v60 = vrot.slane %v385_v28, 2  ;;  %vm1589_vm0 = vnez %v1530_v62  ;;  %vm1591_vm1 = vcmask 1043456  }
 0x149   :  { %v287_v21 = vrot.slane %v261_v11, 4  ;;  %v513_v57 = vsel %vm1589_vm0, %v210_v19, %v1087_v51  ;;  %v627_v31 = vmul.f32 %v1266_v44, %v597_v12  ;;  %v466_v61 = vsel %vm1251_vm10, 0.0, %v1308_v20 }
 0x14a   :  { %v398_v0 = vsel %vm1590_vm12, %v396_v60, %v397_v36  ;;  %v524_v63 = vrot.slane %v513_v57, 2  ;;  %v337_v36 = vsel %vm1232_vm14, 0.0, %v1276_v3 }
 0x14b   :  { %v289_v9 = vsel %vm1591_vm1, %v287_v21, %v288_v2  ;;  %v407_v6 = vsel %vm1139_vm9, %v398_v0, %v385_v28  ;;  %v633_v62 = vmul.f32 %v631_v29, %v627_v31  ;;  %vm1593_vm9 = vmmov %vm1591_vm1 }
 0x14c   :  { %v299_v43 = vsel %vm1165_vm4, %v289_v9, %v261_v11  ;;  %v426_v46 = vrot.slane %v407_v6, 4  ;;  %v526_v51 = vsel %vm1592_vm7, %v524_v63, %v525_v32 }
 0x14d   :  { %v329_v5 = vsel %vm1568_vm2, %v300_v8, %v299_v43  ;;  %v535_v44 = vsel %vm1221_vm11, %v526_v51, %v513_v57  ;;  %v635_v2 = vadd.f32 %v633_v62, %v507_v48  ;;  %vm1594_vm11 = vmmov %vm1591_vm1 }
 0x14e   :  { %v339_v59 = vsub.f32 %v329_v5, %v337_v36  ;;  %v428_v22 = vsel %vm1593_vm9, %v426_v46, %v427_v34  ;;  %v554_v35 = vrot.slane %v535_v44, 4  ;;  %v722_v19 = vpop.eup %721 }
 0x14f   :  { %v437_v32 = vsel %vm1573_vm8, %v428_v22, %v407_v6  ;;  %v639_v40 = vsub.f32 %v1000_v23, %v635_v2  ;;  %637 = vst [vmem:[#allocation9 + $0x8] sm:$0xff] %v635_v2 }
 0x150   :  { %v369_v14 = vmul.f32 %v1283_v39, %v339_v59  ;;  %v459_v27 = vsel %vm1217_vm15, %v438_v54, %v437_v32  ;;  %v556_v3 = vsel %vm1594_vm11, %v554_v35, %v555_v30  ;;  %v594_v39 = vsel %vm1343_vm5, 0.0, %v580_v42 }
 0x151   :  { %v468_v34 = vsub.f32 %v459_v27, %v466_v61  ;;  %v565_v47 = vsel %vm1279_vm3, %v556_v3, %v535_v44  ;;  %641 = vst [vmem:[#allocation8 + $0x8] sm:$0xff] %v639_v40 }
 0x152   :  { %v587_v8 = vsel %vm1293_vm6, %v566_v1, %v565_v47  ;;  %v376_v7 = vmul.f32 %v1082_v58, %v369_v14 }
 0x153   :  { %v497_v24 = vmul.f32 %v1297_v10, %v468_v34  ;;  %v596_v20 = vsub.f32 %v587_v8, %v594_v39 }
 0x155   :  { %v504_v54 = vmul.f32 %v1098_v52, %v497_v24  ;;  %v625_v23 = vmul.f32 %v722_v19, %v596_v20 }
 0x157   :  { %v506_v30 = vadd.f32 %v504_v54, %v376_v7  ;;  %v632_v25 = vmul.f32 %v631_v29, %v625_v23 }
 0x159   :  { %v634_v56 = vadd.f32 %v632_v25, %v506_v30 }
 0x15b   :  { %v638_v18 = vsub.f32 %v989_v13, %v634_v56  ;;  %636 = vst [vmem:[#allocation9] sm:$0xff] %v634_v56 }
 0x15c   :  { %800 = shalt.err (!%p797_p0)
}
 0x15d   :  { %s801_s1 = scalar_lea.hbm %s1501_s6, 256 }
 0x15e   :  { %p802_p1 = scmp.ne.s32.totalorder %s1501_s6, %s801_s1  ;;  %p805_p2 = scmp.lt.u32.totalorder %s801_s1, %s1501_s6 }
 0x160   :  { %p807_p3 = pnand %p805_p2, %p802_p1 }
 0x162   :  { %810 = shalt.err (!%p807_p3)
}
 0x163   :  { %665 = dma.vmem_to_hbm [thread:$0]  %s660_s4, 256, %s1501_s6, [#allocation10], %s842_s7, %s842_s7, %s843_s8   ;;  %640 = vst [vmem:[#allocation8] sm:$0xff] %v638_v18 }
 0x164   :  { %s811_s27 = scalar_lea.vmem %s1458_s17, 256  ;;  %p816_p5 = scmp.lt.s32.totalorder %s1458_s17, %s1458_s17 }
 0x165   :  { %p812_p4 = scmp.ne.s32.totalorder %s1458_s17, %s811_s27  ;;  %p817_p6 = scmp.lt.s32.totalorder %s811_s27, %s811_s27 }
 0x167   :  { %p818_p7 = por %p817_p6, %p816_p5 }
 0x169   :  { %p819_p8 = pnand %p818_p7, %p812_p4 }
 0x16b   :  { %822 = shalt.err (!%p819_p8)
}
 0x16c   :  { %s823_s30 = scalar_lea.hbm %s1500_s5, 256 }
 0x16d   :  { %p824_p9 = scmp.ne.s32.totalorder %s1500_s5, %s823_s30  ;;  %p827_p10 = scmp.lt.u32.totalorder %s823_s30, %s1500_s5 }
 0x16f   :  { %p829_p11 = pnand %p827_p10, %p824_p9 }
 0x171   :  { %832 = shalt.err (!%p829_p11)
}
 0x172   :  { %653 = dma.vmem_to_hbm [thread:$0]  %s1458_s17, 256, %s1500_s5, [#allocation4], %s842_s7, %s842_s7, %s843_s8  }
 0x173   :  { %837 = dma.done.wait [#allocation4], 256  }
 0x174   :  { %838 = vsyncadd [#allocation4], 4294967040 }
 0x175   :  { %839 = dma.done.wait [#allocation10], 256  }
 0x176   :  { %840 = vsyncadd [#allocation10], 4294967040 }
 0x177   :  { %672 = vsyncpa [#allocation3], 1 }
 0x178   :  { %673 = vsyncpa [#allocation6], 1 }
 0x179   :  { %674 = vsyncpa [#allocation4], 1 }
 0x17a   :  { %675 = vsyncpa [#allocation10], 1 }

</bundles_post_ra>
